<compile_context>
chip_gen: v5e
topology: v5e:2x2
jax: 0.10.0
libtpu: 0.0.40
codegen_flags: <defaults>
</compile_context>

<pallas_src>
import functools

import jax
import jax.numpy as jnp
from jax.experimental import pallas as pl
from jax.experimental.pallas import tpu as pltpu


def _round_up(x, m):
    return ((x + m - 1) // m) * m


def _pad2(a, shape):
    pads = [(0, t - s) for s, t in zip(a.shape, shape)]
    if all(p == (0, 0) for p in pads):
        return a
    return jnp.pad(a, pads)


def _mlp_kernel(x_ref, w1_ref, b1_ref, w2_ref, b2_ref, o_ref, *, hk):
    """y = relu(x @ W1 + b1) @ W2 + b2, with the H contraction chunked by hk."""
    x = x_ref[...]                                      # (tb, E)  bf16
    tb = x.shape[0]
    H = w1_ref.shape[1]
    L = o_ref.shape[1]

    acc = jnp.zeros((tb, L), jnp.float32)
    # Static (unrolled) chunking over the hidden dim: static ref slices are
    # free, and per-chunk h stays within a few vregs instead of (tb, H) f32.
    for k in range(H // hk):
        lo = k * hk
        h = jnp.dot(x, w1_ref[:, lo:lo + hk],
                    preferred_element_type=jnp.float32)   # MXU, f32 acc
        h = h + b1_ref[:, lo:lo + hk]                     # f32 bias add
        h = jnp.maximum(h, 0.0).astype(w2_ref.dtype)      # ReLU, cast to bf16
        acc = acc + jnp.dot(h, w2_ref[lo:lo + hk, :],
                            preferred_element_type=jnp.float32)

    o_ref[...] = (acc + b2_ref[...]).astype(o_ref.dtype)  # f32 epilogue


def text_condition_projector(x, w1, b1, w2, b2, *, tb_max=256):
    """Forward pass of TextConditionProjector.

    x: (B, E); w1: (E, H); b1: (H,) or (1, H); w2: (H, L); b2: (L,) or (1, L).
    Weights are stored pre-transposed as (in_features, out_features).
    Returns (B, L) in x.dtype.
    """
    out_dtype = x.dtype
    B, E = x.shape
    H = w1.shape[1]
    L = w2.shape[1]

    # bf16 matmul operands, f32 biases (accumulation stays f32 via
    # preferred_element_type inside the kernel).
    xb = x.astype(jnp.bfloat16)
    w1b = w1.astype(jnp.bfloat16)
    w2b = w2.astype(jnp.bfloat16)
    b1f = jnp.asarray(b1, jnp.float32).reshape(1, H)
    b2f = jnp.asarray(b2, jnp.float32).reshape(1, L)

    # Pad lane/contraction dims to multiples of 128 (zero padding is inert for
    # this MLP) so every tile is (8, 128)-aligned and stores are unmasked.
    Ep = _round_up(E, 128)
    Hp = _round_up(H, 128)
    Lp = _round_up(L, 128)
    w1b = _pad2(w1b, (Ep, Hp))
    b1f = _pad2(b1f, (1, Hp))
    w2b = _pad2(w2b, (Hp, Lp))
    b2f = _pad2(b2f, (1, Lp))

    # Batch tiling: one fat grid step for small B, else tiles of tb_max rows.
    tb = min(_round_up(B, 8), tb_max)
    Bp = _round_up(B, tb)
    xb = _pad2(xb, (Bp, Ep))

    hk = 256 if Hp % 256 == 0 else 128
    grid = (Bp // tb,)

    out = pl.pallas_call(
        functools.partial(_mlp_kernel, hk=hk),
        out_shape=jax.ShapeDtypeStruct((Bp, Lp), out_dtype),
        grid_spec=pltpu.PrefetchScalarGridSpec(
            num_scalar_prefetch=0,
            grid=grid,
            in_specs=[
                pl.BlockSpec((tb, Ep), lambda i: (i, 0)),   # x tile
                pl.BlockSpec((Ep, Hp), lambda i: (0, 0)),   # W1 (resident)
                pl.BlockSpec((1, Hp), lambda i: (0, 0)),    # b1 (resident)
                pl.BlockSpec((Hp, Lp), lambda i: (0, 0)),   # W2 (resident)
                pl.BlockSpec((1, Lp), lambda i: (0, 0)),    # b2 (resident)
            ],
            out_specs=pl.BlockSpec((tb, Lp), lambda i: (i, 0)),
        ),
        compiler_params=pltpu.CompilerParams(
            dimension_semantics=("parallel",)),
    )(xb, w1b, b1f, w2b, b2f)

    return out[:B, :L]


def reference_bf16(x, w1, b1, w2, b2):
    """Mirrors the kernel numerics (bf16 matmuls, f32 accumulation/epilogue)."""
    h = jnp.dot(x.astype(jnp.bfloat16), w1.astype(jnp.bfloat16),
                preferred_element_type=jnp.float32) + b1.reshape(1, -1)
    h = jnp.maximum(h, 0.0).astype(jnp.bfloat16)
    y = jnp.dot(h, w2.astype(jnp.bfloat16),
                preferred_element_type=jnp.float32) + b2.reshape(1, -1)
    return y


def reference_f32(x, w1, b1, w2, b2):
    h = jnp.maximum(x @ w1 + b1.reshape(1, -1), 0.0)
    return h @ w2 + b2.reshape(1, -1)


if __name__ == "__main__":
    # Module defaults: embedding_dim=1024, hidden=512, latent_dim=256; small batch.
    B, E, H, L = 6, 1024, 512, 256

    key = jax.random.PRNGKey(0)
    kx, k1, k2, k3, k4 = jax.random.split(key, 5)

    x = jax.random.normal(kx, (B, E), dtype=jnp.float32)
    # Weights stored as (in_features, out_features).
    w1 = jax.random.normal(k1, (E, H), dtype=jnp.float32) * (1.0 / jnp.sqrt(E))
    b1 = jax.random.normal(k2, (H,), dtype=jnp.float32) * 0.01
    w2 = jax.random.normal(k3, (H, L), dtype=jnp.float32) * (1.0 / jnp.sqrt(H))
    b2 = jax.random.normal(k4, (L,), dtype=jnp.float32) * 0.01

    out = jax.block_until_ready(text_condition_projector(x, w1, b1, w2, b2))
    assert out.shape == (B, L)

    ref_b = reference_bf16(x, w1, b1, w2, b2)
    ref_f = reference_f32(x, w1, b1, w2, b2)
    assert jnp.allclose(out, ref_b, atol=2e-3, rtol=2e-3), "mismatch vs bf16-path reference"
    assert jnp.allclose(out, ref_f, atol=5e-2, rtol=5e-2), "mismatch vs f32 reference"

    print("KERNEL_OK")
</pallas_src>

<mosaic_0001>
module attributes {stable_mosaic.version = 11 : i64} {
  func.func @_mlp_kernel(%arg0: i32, %arg1: memref<8x1024xbf16, #tpu.memory_space<vmem>>, %arg2: memref<1024x512xbf16, #tpu.memory_space<vmem>>, %arg3: memref<1x512xf32, #tpu.memory_space<vmem>>, %arg4: memref<512x256xbf16, #tpu.memory_space<vmem>>, %arg5: memref<1x256xf32, #tpu.memory_space<vmem>>, %arg6: memref<8x256xf32, #tpu.memory_space<vmem>>) attributes {dimension_semantics = [#tpu.dimension_semantics<parallel>], iteration_bounds = array<i64: 1>, scalar_prefetch = 0 : i64, scratch_operands = 0 : i64, tpu.core_type = #tpu.core_type<tc>, window_params = [{transform_indices = @transform_0, window_bounds = array<i64: 8, 1024>}, {pipeline_mode = #tpu.pipeline_mode<synchronous>, transform_indices = @transform_1, window_bounds = array<i64: 1024, 512>}, {pipeline_mode = #tpu.pipeline_mode<synchronous>, transform_indices = @transform_2, window_bounds = array<i64: 1, 512>}, {pipeline_mode = #tpu.pipeline_mode<synchronous>, transform_indices = @transform_3, window_bounds = array<i64: 512, 256>}, {pipeline_mode = #tpu.pipeline_mode<synchronous>, transform_indices = @transform_4, window_bounds = array<i64: 1, 256>}, {transform_indices = @transform_5, window_bounds = array<i64: 8, 256>}]} {
    %c0 = arith.constant 0 : index
    %c0_0 = arith.constant 0 : index
    %0 = vector.load %arg1[%c0, %c0_0] : memref<8x1024xbf16, #tpu.memory_space<vmem>>, vector<8x1024xbf16>
    %cst = arith.constant 0.000000e+00 : f32
    %1 = vector.broadcast %cst : f32 to vector<8x256xf32>
    %c0_1 = arith.constant 0 : index
    %c0_2 = arith.constant 0 : index
    %2 = vector.load %arg2[%c0_1, %c0_2] : memref<1024x512xbf16, #tpu.memory_space<vmem>>, vector<1024x256xbf16>
    %cst_3 = arith.constant dense<0.000000e+00> : vector<8x256xf32>
    %3 = tpu.matmul %0, %2, %cst_3 {dimension_numbers = #tpu.dot_dimension_numbers<[1], [0], [0], [1], [0, 0, 1, 1], [], []>} : vector<8x1024xbf16>, vector<1024x256xbf16>, vector<8x256xf32> -> vector<8x256xf32>
    %c0_4 = arith.constant 0 : index
    %c0_5 = arith.constant 0 : index
    %4 = vector.load %arg3[%c0_4, %c0_5] : memref<1x512xf32, #tpu.memory_space<vmem>>, vector<1x256xf32>
    %5 = vector.broadcast %4 : vector<1x256xf32> to vector<8x256xf32>
    %6 = arith.addf %3, %5 : vector<8x256xf32>
    %cst_6 = arith.constant 0.000000e+00 : f32
    %7 = vector.broadcast %cst_6 : f32 to vector<8x256xf32>
    %8 = arith.maximumf %6, %7 : vector<8x256xf32>
    %9 = arith.truncf %8 : vector<8x256xf32> to vector<8x256xbf16>
    %c0_7 = arith.constant 0 : index
    %c0_8 = arith.constant 0 : index
    %10 = vector.load %arg4[%c0_7, %c0_8] : memref<512x256xbf16, #tpu.memory_space<vmem>>, vector<256x256xbf16>
    %cst_9 = arith.constant dense<0.000000e+00> : vector<8x256xf32>
    %11 = tpu.matmul %9, %10, %cst_9 {dimension_numbers = #tpu.dot_dimension_numbers<[1], [0], [0], [1], [0, 0, 1, 1], [], []>} : vector<8x256xbf16>, vector<256x256xbf16>, vector<8x256xf32> -> vector<8x256xf32>
    %12 = arith.addf %1, %11 : vector<8x256xf32>
    %c0_10 = arith.constant 0 : index
    %c256 = arith.constant 256 : index
    %13 = vector.load %arg2[%c0_10, %c256] : memref<1024x512xbf16, #tpu.memory_space<vmem>>, vector<1024x256xbf16>
    %cst_11 = arith.constant dense<0.000000e+00> : vector<8x256xf32>
    %14 = tpu.matmul %0, %13, %cst_11 {dimension_numbers = #tpu.dot_dimension_numbers<[1], [0], [0], [1], [0, 0, 1, 1], [], []>} : vector<8x1024xbf16>, vector<1024x256xbf16>, vector<8x256xf32> -> vector<8x256xf32>
    %c0_12 = arith.constant 0 : index
    %c256_13 = arith.constant 256 : index
    %15 = vector.load %arg3[%c0_12, %c256_13] : memref<1x512xf32, #tpu.memory_space<vmem>>, vector<1x256xf32>
    %16 = vector.broadcast %15 : vector<1x256xf32> to vector<8x256xf32>
    %17 = arith.addf %14, %16 : vector<8x256xf32>
    %cst_14 = arith.constant 0.000000e+00 : f32
    %18 = vector.broadcast %cst_14 : f32 to vector<8x256xf32>
    %19 = arith.maximumf %17, %18 : vector<8x256xf32>
    %20 = arith.truncf %19 : vector<8x256xf32> to vector<8x256xbf16>
    %c256_15 = arith.constant 256 : index
    %c0_16 = arith.constant 0 : index
    %21 = vector.load %arg4[%c256_15, %c0_16] : memref<512x256xbf16, #tpu.memory_space<vmem>>, vector<256x256xbf16>
    %cst_17 = arith.constant dense<0.000000e+00> : vector<8x256xf32>
    %22 = tpu.matmul %20, %21, %cst_17 {dimension_numbers = #tpu.dot_dimension_numbers<[1], [0], [0], [1], [0, 0, 1, 1], [], []>} : vector<8x256xbf16>, vector<256x256xbf16>, vector<8x256xf32> -> vector<8x256xf32>
    %23 = arith.addf %12, %22 : vector<8x256xf32>
    %c0_18 = arith.constant 0 : index
    %c0_19 = arith.constant 0 : index
    %24 = vector.load %arg5[%c0_18, %c0_19] : memref<1x256xf32, #tpu.memory_space<vmem>>, vector<1x256xf32>
    %25 = vector.broadcast %24 : vector<1x256xf32> to vector<8x256xf32>
    %26 = arith.addf %23, %25 : vector<8x256xf32>
    %c0_20 = arith.constant 0 : index
    %c0_21 = arith.constant 0 : index
    %27 = vector.load %arg6[%c0_20, %c0_21] : memref<8x256xf32, #tpu.memory_space<vmem>>, vector<8x256xf32>
    tpu.vector_store %arg6[%c0_20, %c0_21], %26 {strides = array<i32>} : memref<8x256xf32, #tpu.memory_space<vmem>>, vector<8x256xf32>,
    return
  }
  func.func @transform_0(%arg0: i32) -> (i32, i32) {
    %c0_i32 = arith.constant 0 : i32
    %c0_i32_0 = arith.constant 0 : i32
    return %arg0, %c0_i32 : i32, i32
  }
  func.func @transform_1(%arg0: i32) -> (i32, i32) {
    %c0_i32 = arith.constant 0 : i32
    %c0_i32_0 = arith.constant 0 : i32
    %c0_i32_1 = arith.constant 0 : i32
    return %c0_i32, %c0_i32_0 : i32, i32
  }
  func.func @transform_2(%arg0: i32) -> (i32, i32) {
    %c0_i32 = arith.constant 0 : i32
    %c0_i32_0 = arith.constant 0 : i32
    %c0_i32_1 = arith.constant 0 : i32
    return %c0_i32, %c0_i32_0 : i32, i32
  }
  func.func @transform_3(%arg0: i32) -> (i32, i32) {
    %c0_i32 = arith.constant 0 : i32
    %c0_i32_0 = arith.constant 0 : i32
    %c0_i32_1 = arith.constant 0 : i32
    return %c0_i32, %c0_i32_0 : i32, i32
  }
  func.func @transform_4(%arg0: i32) -> (i32, i32) {
    %c0_i32 = arith.constant 0 : i32
    %c0_i32_0 = arith.constant 0 : i32
    %c0_i32_1 = arith.constant 0 : i32
    return %c0_i32, %c0_i32_0 : i32, i32
  }
  func.func @transform_5(%arg0: i32) -> (i32, i32) {
    %c0_i32 = arith.constant 0 : i32
    %c0_i32_0 = arith.constant 0 : i32
    return %arg0, %c0_i32 : i32, i32
  }
}

</mosaic_0001>

<bundles_post_ra>
// kernel: tpu_custom_call.1
= control target key start
LH: loop header
LB: loop body
LE: loop exit
PB: predicated region body
PF: predicated region fallthrough
CT: control target
= control target key end

     0   :  { %10 = vsyncpa [#allocation3], 0  ;;  %s4463_s0 = inlined_call_operand.hbm [shape: bf16[8,1024], index: 0, kind: input, shape index: {}]   ;;  %s4464_s1 = inlined_call_operand.hbm [shape: bf16[1024,512], index: 1, kind: input, shape index: {}]   ;;  %s4465_s2 = inlined_call_operand.hbm [shape: f32[1,512], index: 2, kind: input, shape index: {}]   ;;  %s4466_s3 = inlined_call_operand.hbm [shape: bf16[512,256], index: 3, kind: input, shape index: {}]   ;;  %s4467_s4 = inlined_call_operand.vmem [shape: f32[1,256], index: 4, kind: input, shape index: {}]   ;;  %s4468_s5 = inlined_call_operand.hbm [shape: f32[8,256], index: 5, kind: output, shape index: {}]  }
   0x1   :  { %11 = vsyncpa [#allocation6], 0 }
   0x2   :  { %12 = vsyncpa [#allocation9], 0  ;;  %s29_s20 = sshll.u32 %s4464_s1, 4  ;;  %s30_s20 = int_to_ptr.hbm [resolvable:$true] %s29_s20 }
   0x3   :  { %13 = vsyncpa [#allocation4], 0  ;;  %s4338_s21 = smov [#allocation5]   ;;  %s19_s25 = sshll.u32 %s4463_s0, 4  ;;  %s20_s25 = int_to_ptr.hbm [resolvable:$true] %s19_s25 }
   0x4   :  { %s31_s22 = sshll.u32 %s4338_s21, 4  ;;  %s4339_s26 = smov 256   ;;  %s32_s22 = int_to_ptr.vmem [resolvable:$true] %s31_s22 }
   0x5   :  { %s4340_s27 = smov 16   ;;  %s4341_s28 = smov [#allocation2]  }
   0x6   :  { %37 = dma.hbm_to_vmem [thread:$0]  %s30_s20, 32768, %s32_s22, [#allocation6], %s4339_s26, %s4339_s26, %s4340_s27  }
   0x7   :  { %s21_s29 = sshll.u32 %s4341_s28, 4  ;;  %s43_s7 = sshll.u32 %s4465_s2, 4  ;;  %s22_s29 = int_to_ptr.vmem [resolvable:$true] %s21_s29  ;;  %s44_s7 = int_to_ptr.hbm [resolvable:$true] %s43_s7 }
   0x8   :  { %24 = dma.hbm_to_vmem [thread:$0]  %s20_s25, 512, %s22_s29, [#allocation3]  }
   0x9   :  { %s53_s9 = sshll.u32 %s4466_s3, 4  ;;  %s4342_s10 = smov [#allocation7]   ;;  %s54_s9 = int_to_ptr.hbm [resolvable:$true] %s53_s9 }
   0xa   :  { %s45_s11 = sshll.u32 %s4342_s10, 4  ;;  %s4343_s0 = smov [#allocation8]   ;;  %s46_s11 = int_to_ptr.vmem [resolvable:$true] %s45_s11 }
   0xb   :  { %48 = dma.hbm_to_vmem [thread:$0]  %s44_s7, 64, %s46_s11, [#allocation6]  }
   0xc   :  { %s55_s12 = sshll.u32 %s4343_s0, 4  ;;  %s4344_s13 = smov 128   ;;  %s56_s12 = int_to_ptr.vmem [resolvable:$true] %s55_s12 }
   0xd   :  { %s4345_s14 = smov 8  }
   0xe   :  { %61 = dma.hbm_to_vmem [thread:$0]  %s54_s9, 8192, %s56_s12, [#allocation9], %s4344_s13, %s4344_s13, %s4345_s14  }
   0xf   :  { %4330 = dma.done.wait [#allocation3], 512  }
  0x10   :  { %4331 = vsyncadd [#allocation3], 4294966784 }
  0x11   :  { %4332 = dma.done.wait [#allocation6], 32832  }
  0x12   :  { %4333 = vsyncadd [#allocation6], 4294934464 }
  0x13   :  { %4334 = dma.done.wait [#allocation9], 8192  }
  0x14   :  { %4335 = vsyncadd [#allocation9], 4294959104  ;;  %v2659_v0 = vld [vmem:[#allocation5 + $0xe0] sm:$0xf]  ;;  %v3896_v1 = vld [vmem:[#allocation5 + $0xec] sm:$0xf0] }
  0x15   :  { %v2723_v2 = vld [vmem:[#allocation5 + $0x1e0] sm:$0xf]  ;;  %v2660_v3 = vor.u32 %v3896_v1, %v2659_v0  ;;  %v3912_v4 = vld [vmem:[#allocation5 + $0x1ec] sm:$0xf0]  ;;  %s4346_s15 = smov [#allocation10]   ;;  %s2589_s19 = sshll.u32 %s4468_s5, 4  ;;  %s2590_s19 = int_to_ptr.hbm [resolvable:$true] %s2589_s19 }
  0x16   :  { %v2787_v5 = vld [vmem:[#allocation5 + $0x2e0] sm:$0xf]  ;;  %v3928_v6 = vld [vmem:[#allocation5 + $0x2ec] sm:$0xf0]  ;;  %v2724_v7 = vor.u32 %v3912_v4, %v2723_v2  ;;  %s2587_s16 = sshll.u32 %s4346_s15, 4  ;;  %s2588_s16 = int_to_ptr.vmem [resolvable:$true] %s2587_s16 }
  0x17   :  { %v2788_v8 = vor.u32 %v3928_v6, %v2787_v5  ;;  %v2851_v9 = vld [vmem:[#allocation5 + $0x3e0] sm:$0xf]  ;;  %v3944_v10 = vld [vmem:[#allocation5 + $0x3ec] sm:$0xf0]  ;;  %886 = vmatpush.bf16.msra.mxu0 %v2660_v3 }
  0x18   :  { %v2651_v11 = vld [vmem:[#allocation5 + $0xc0] sm:$0xf]  ;;  %v2852_v12 = vor.u32 %v3944_v10, %v2851_v9  ;;  %v3894_v13 = vld [vmem:[#allocation5 + $0xcc] sm:$0xf0]  ;;  %899 = vmatpush.bf16.msra.mxu1 %v2724_v7 }
  0x19   :  { %v2715_v14 = vld [vmem:[#allocation5 + $0x1c0] sm:$0xf]  ;;  %v3910_v15 = vld [vmem:[#allocation5 + $0x1cc] sm:$0xf0]  ;;  %912 = vmatpush.bf16.msra.mxu2 %v2788_v8  ;;  %v2652_v16 = vor.u32 %v3894_v13, %v2651_v11 }
  0x1a   :  { %v2716_v17 = vor.u32 %v3910_v15, %v2715_v14  ;;  %v2779_v18 = vld [vmem:[#allocation5 + $0x2c0] sm:$0xf]  ;;  %v3926_v19 = vld [vmem:[#allocation5 + $0x2cc] sm:$0xf0]  ;;  %925 = vmatpush.bf16.msra.mxu3 %v2852_v12 }
  0x1b   :  { %v2843_v20 = vld [vmem:[#allocation5 + $0x3c0] sm:$0xf]  ;;  %v2780_v21 = vor.u32 %v3926_v19, %v2779_v18  ;;  %v3942_v22 = vld [vmem:[#allocation5 + $0x3cc] sm:$0xf0]  ;;  %887 = vmatpush.bf16.msra.mxu0 %v2652_v16 }
  0x1c   :  { %v2643_v23 = vld [vmem:[#allocation5 + $0xa0] sm:$0xf]  ;;  %v3892_v24 = vld [vmem:[#allocation5 + $0xac] sm:$0xf0]  ;;  %v2844_v25 = vor.u32 %v3942_v22, %v2843_v20  ;;  %900 = vmatpush.bf16.msra.mxu1 %v2716_v17 }
  0x1d   :  { %v2707_v26 = vld [vmem:[#allocation5 + $0x1a0] sm:$0xf]  ;;  %v3908_v27 = vld [vmem:[#allocation5 + $0x1ac] sm:$0xf0]  ;;  %v2644_v29 = vor.u32 %v3892_v24, %v2643_v23  ;;  %913 = vmatpush.bf16.msra.mxu2 %v2780_v21 }
  0x1e   :  { %v2771_v28 = vld [vmem:[#allocation5 + $0x2a0] sm:$0xf]  ;;  %v3924_v30 = vld [vmem:[#allocation5 + $0x2ac] sm:$0xf0]  ;;  %v2708_v33 = vor.u32 %v3908_v27, %v2707_v26  ;;  %926 = vmatpush.bf16.msra.mxu3 %v2844_v25 }
  0x1f   :  { %v2835_v31 = vld [vmem:[#allocation5 + $0x3a0] sm:$0xf]  ;;  %v3940_v32 = vld [vmem:[#allocation5 + $0x3ac] sm:$0xf0]  ;;  %v2772_v34 = vor.u32 %v3924_v30, %v2771_v28  ;;  %888 = vmatpush.bf16.msra.mxu0 %v2644_v29 }
  0x20   :  { %v2635_v35 = vld [vmem:[#allocation5 + $0x80] sm:$0xf]  ;;  %v3890_v36 = vld [vmem:[#allocation5 + $0x8c] sm:$0xf0]  ;;  %v2836_v38 = vor.u32 %v3940_v32, %v2835_v31  ;;  %901 = vmatpush.bf16.msra.mxu1 %v2708_v33 }
  0x21   :  { %v2699_v37 = vld [vmem:[#allocation5 + $0x180] sm:$0xf]  ;;  %v3906_v39 = vld [vmem:[#allocation5 + $0x18c] sm:$0xf0]  ;;  %v2636_v44 = vor.u32 %v3890_v36, %v2635_v35  ;;  %914 = vmatpush.bf16.msra.mxu2 %v2772_v34 }
  0x22   :  { %v2763_v40 = vld [vmem:[#allocation5 + $0x280] sm:$0xf]  ;;  %v3922_v41 = vld [vmem:[#allocation5 + $0x28c] sm:$0xf0]  ;;  %v2700_v45 = vor.u32 %v3906_v39, %v2699_v37  ;;  %927 = vmatpush.bf16.msra.mxu3 %v2836_v38 }
  0x23   :  { %v2827_v42 = vld [vmem:[#allocation5 + $0x380] sm:$0xf]  ;;  %v3938_v43 = vld [vmem:[#allocation5 + $0x38c] sm:$0xf0]  ;;  %v2764_v46 = vor.u32 %v3922_v41, %v2763_v40  ;;  %889 = vmatpush.bf16.msra.mxu0 %v2636_v44 }
  0x24   :  { %v2627_v47 = vld [vmem:[#allocation5 + $0x60] sm:$0xf]  ;;  %v3888_v48 = vld [vmem:[#allocation5 + $0x6c] sm:$0xf0]  ;;  %v2828_v50 = vor.u32 %v3938_v43, %v2827_v42  ;;  %902 = vmatpush.bf16.msra.mxu1 %v2700_v45 }
  0x25   :  { %v2691_v49 = vld [vmem:[#allocation5 + $0x160] sm:$0xf]  ;;  %v3904_v51 = vld [vmem:[#allocation5 + $0x16c] sm:$0xf0]  ;;  %v2628_v56 = vor.u32 %v3888_v48, %v2627_v47  ;;  %915 = vmatpush.bf16.msra.mxu2 %v2764_v46 }
  0x26   :  { %v2755_v52 = vld [vmem:[#allocation5 + $0x260] sm:$0xf]  ;;  %v3920_v53 = vld [vmem:[#allocation5 + $0x26c] sm:$0xf0]  ;;  %v2692_v57 = vor.u32 %v3904_v51, %v2691_v49  ;;  %928 = vmatpush.bf16.msra.mxu3 %v2828_v50 }
  0x27   :  { %v2819_v54 = vld [vmem:[#allocation5 + $0x360] sm:$0xf]  ;;  %v3936_v55 = vld [vmem:[#allocation5 + $0x36c] sm:$0xf0]  ;;  %v2756_v58 = vor.u32 %v3920_v53, %v2755_v52  ;;  %890 = vmatpush.bf16.msra.mxu0 %v2628_v56 }
  0x28   :  { %v2619_v59 = vld [vmem:[#allocation5 + $0x40] sm:$0xf]  ;;  %v3886_v60 = vld [vmem:[#allocation5 + $0x4c] sm:$0xf0]  ;;  %v2820_v62 = vor.u32 %v3936_v55, %v2819_v54  ;;  %903 = vmatpush.bf16.msra.mxu1 %v2692_v57 }
  0x29   :  { %v2683_v61 = vld [vmem:[#allocation5 + $0x140] sm:$0xf]  ;;  %v3902_v63 = vld [vmem:[#allocation5 + $0x14c] sm:$0xf0]  ;;  %v2620_v4 = vor.u32 %v3886_v60, %v2619_v59  ;;  %916 = vmatpush.bf16.msra.mxu2 %v2756_v58 }
  0x2a   :  { %v2747_v0 = vld [vmem:[#allocation5 + $0x240] sm:$0xf]  ;;  %v3918_v1 = vld [vmem:[#allocation5 + $0x24c] sm:$0xf0]  ;;  %v2684_v5 = vor.u32 %v3902_v63, %v2683_v61  ;;  %929 = vmatpush.bf16.msra.mxu3 %v2820_v62 }
  0x2b   :  { %v2811_v2 = vld [vmem:[#allocation5 + $0x340] sm:$0xf]  ;;  %v3934_v3 = vld [vmem:[#allocation5 + $0x34c] sm:$0xf0]  ;;  %v2748_v6 = vor.u32 %v3918_v1, %v2747_v0  ;;  %891 = vmatpush.bf16.msra.mxu0 %v2620_v4 }
  0x2c   :  { %v2611_v7 = vld [vmem:[#allocation5 + $0x20] sm:$0xf]  ;;  %v3884_v8 = vld [vmem:[#allocation5 + $0x2c] sm:$0xf0]  ;;  %v2812_v10 = vor.u32 %v3934_v3, %v2811_v2  ;;  %904 = vmatpush.bf16.msra.mxu1 %v2684_v5  ;;  %v81_v2 = vld [vmem:[#allocation2 + $0x8] sm:$0xff] }
  0x2d   :  { %v2675_v9 = vld [vmem:[#allocation5 + $0x120] sm:$0xf]  ;;  %v3900_v11 = vld [vmem:[#allocation5 + $0x12c] sm:$0xf0]  ;;  %v2612_v16 = vor.u32 %v3884_v8, %v2611_v7  ;;  %917 = vmatpush.bf16.msra.mxu2 %v2748_v6  ;;  %v224_v8 = vunpack.c.l.b16 %v81_v2 }
  0x2e   :  { %v2739_v12 = vld [vmem:[#allocation5 + $0x220] sm:$0xf]  ;;  %v3916_v13 = vld [vmem:[#allocation5 + $0x22c] sm:$0xf0]  ;;  %v2676_v19 = vor.u32 %v3900_v11, %v2675_v9  ;;  %930 = vmatpush.bf16.msra.mxu3 %v2812_v10  ;;  %v225_v10 = vunpack.c.h.b16 %v81_v2 }
  0x2f   :  { %v2803_v14 = vld [vmem:[#allocation5 + $0x320] sm:$0xf]  ;;  %v3932_v15 = vld [vmem:[#allocation5 + $0x32c] sm:$0xf0]  ;;  %v2740_v20 = vor.u32 %v3916_v13, %v2739_v12  ;;  %892 = vmatpush.bf16.msra.mxu0 %v2612_v16 }
  0x30   :  { %v2603_v17 = vld [vmem:[#allocation5] sm:$0xf]  ;;  %v3882_v18 = vld [vmem:[#allocation5 + $0xc] sm:$0xf0]  ;;  %v2804_v24 = vor.u32 %v3932_v15, %v2803_v14  ;;  %905 = vmatpush.bf16.msra.mxu1 %v2676_v19 }
  0x31   :  { %v2667_v21 = vld [vmem:[#allocation5 + $0x100] sm:$0xf]  ;;  %v3898_v22 = vld [vmem:[#allocation5 + $0x10c] sm:$0xf0]  ;;  %v2604_v31 = vor.u32 %v3882_v18, %v2603_v17  ;;  %918 = vmatpush.bf16.msra.mxu2 %v2740_v20  ;;  %v4389_v18 = vpack.c.b16 %v224_v8, %v224_v8  ;;  %v4393_v20 = vpack.c.b16 %v225_v10, %v225_v10  ;;  %v3895_v8 = vld [vmem:[#allocation5 + $0xe4] sm:$0xf] }
  0x32   :  { %v2731_v23 = vld [vmem:[#allocation5 + $0x200] sm:$0xf]  ;;  %v3914_v25 = vld [vmem:[#allocation5 + $0x20c] sm:$0xf0]  ;;  %v2668_v35 = vor.u32 %v3898_v22, %v2667_v21  ;;  %931 = vmatpush.bf16.msra.mxu3 %v2804_v24  ;;  %v3911_v10 = vld [vmem:[#allocation5 + $0x1e4] sm:$0xf] }
  0x33   :  { %v2795_v26 = vld [vmem:[#allocation5 + $0x300] sm:$0xf]  ;;  %v3930_v27 = vld [vmem:[#allocation5 + $0x30c] sm:$0xf0]  ;;  %v2732_v36 = vor.u32 %v3914_v25, %v2731_v23  ;;  %893 = vmatpush.bf16.msra.mxu0 %v2604_v31 }
  0x34   :  { %v2915_v28 = vld [vmem:[#allocation5 + $0x4e0] sm:$0xf]  ;;  %v3960_v29 = vld [vmem:[#allocation5 + $0x4ec] sm:$0xf0]  ;;  %v2796_v39 = vor.u32 %v3930_v27, %v2795_v26  ;;  %906 = vmatpush.bf16.msra.mxu1 %v2668_v35 }
  0x35   :  { %v2979_v30 = vld [vmem:[#allocation5 + $0x5e0] sm:$0xf]  ;;  %v3976_v32 = vld [vmem:[#allocation5 + $0x5ec] sm:$0xf0]  ;;  %v2916_v40 = vor.u32 %v3960_v29, %v2915_v28  ;;  %919 = vmatpush.bf16.msra.mxu2 %v2732_v36 }
  0x36   :  { %v3043_v33 = vld [vmem:[#allocation5 + $0x6e0] sm:$0xf]  ;;  %v3992_v34 = vld [vmem:[#allocation5 + $0x6ec] sm:$0xf0]  ;;  %v2980_v41 = vor.u32 %v3976_v32, %v2979_v30  ;;  %932 = vmatpush.bf16.msra.mxu3 %v2796_v39 }
  0x37   :  { %v3107_v37 = vld [vmem:[#allocation5 + $0x7e0] sm:$0xf]  ;;  %v4008_v38 = vld [vmem:[#allocation5 + $0x7ec] sm:$0xf0]  ;;  %v3044_v42 = vor.u32 %v3992_v34, %v3043_v33  ;;  %938 = vmatpush.bf16.msrb.mxu0 %v2916_v40 }
  0x38   :  { %v2907_v43 = vld [vmem:[#allocation5 + $0x4c0] sm:$0xf]  ;;  %v3958_v44 = vld [vmem:[#allocation5 + $0x4cc] sm:$0xf0]  ;;  %v3108_v46 = vor.u32 %v4008_v38, %v3107_v37  ;;  %951 = vmatpush.bf16.msrb.mxu1 %v2980_v41  ;;  %920 = vmatmul.bf16.vlgmr.msra.gmra.mxu2 %v4389_v18 }
  0x39   :  { %v2971_v45 = vld [vmem:[#allocation5 + $0x5c0] sm:$0xf]  ;;  %v3974_v47 = vld [vmem:[#allocation5 + $0x5cc] sm:$0xf0]  ;;  %v2908_v52 = vor.u32 %v3958_v44, %v2907_v43  ;;  %964 = vmatpush.bf16.msrb.mxu2 %v3044_v42  ;;  %933 = vmatmul.bf16.vlgmr.msra.gmra.mxu3 %v4393_v20 }
  0x3a   :  { %v3035_v48 = vld [vmem:[#allocation5 + $0x6c0] sm:$0xf]  ;;  %v3990_v49 = vld [vmem:[#allocation5 + $0x6cc] sm:$0xf0]  ;;  %v2972_v54 = vor.u32 %v3974_v47, %v2971_v45  ;;  %977 = vmatpush.bf16.msrb.mxu3 %v3108_v46 }
  0x3b   :  { %v3099_v50 = vld [vmem:[#allocation5 + $0x7c0] sm:$0xf]  ;;  %v4006_v51 = vld [vmem:[#allocation5 + $0x7cc] sm:$0xf0]  ;;  %v3036_v55 = vor.u32 %v3990_v49, %v3035_v48  ;;  %939 = vmatpush.bf16.msrb.mxu0 %v2908_v52 }
  0x3c   :  { %v2899_v53 = vld [vmem:[#allocation5 + $0x4a0] sm:$0xf]  ;;  %v3956_v56 = vld [vmem:[#allocation5 + $0x4ac] sm:$0xf0]  ;;  %v3100_v59 = vor.u32 %v4006_v51, %v3099_v50  ;;  %952 = vmatpush.bf16.msrb.mxu1 %v2972_v54 }
  0x3d   :  { %v2963_v57 = vld [vmem:[#allocation5 + $0x5a0] sm:$0xf]  ;;  %v3972_v58 = vld [vmem:[#allocation5 + $0x5ac] sm:$0xf0]  ;;  %v2900_v0 = vor.u32 %v3956_v56, %v2899_v53  ;;  %965 = vmatpush.bf16.msrb.mxu2 %v3036_v55 }
  0x3e   :  { %v3027_v60 = vld [vmem:[#allocation5 + $0x6a0] sm:$0xf]  ;;  %v3988_v61 = vld [vmem:[#allocation5 + $0x6ac] sm:$0xf0]  ;;  %v2964_v1 = vor.u32 %v3972_v58, %v2963_v57  ;;  %978 = vmatpush.bf16.msrb.mxu3 %v3100_v59 }
  0x3f   :  { %v3091_v62 = vld [vmem:[#allocation5 + $0x7a0] sm:$0xf]  ;;  %v4004_v63 = vld [vmem:[#allocation5 + $0x7ac] sm:$0xf0]  ;;  %v3028_v4 = vor.u32 %v3988_v61, %v3027_v60  ;;  %940 = vmatpush.bf16.msrb.mxu0 %v2900_v0 }
  0x40   :  { %v80_v3 = vld [vmem:[#allocation2] sm:$0xff]  ;;  %v3954_v6 = vld [vmem:[#allocation5 + $0x48c] sm:$0xf0]  ;;  %v3092_v11 = vor.u32 %v4004_v63, %v3091_v62  ;;  %953 = vmatpush.bf16.msrb.mxu1 %v2964_v1 }
  0x41   :  { %v2891_v5 = vld [vmem:[#allocation5 + $0x480] sm:$0xf]  ;;  %v222_v9 = vunpack.c.l.b16 %v80_v3  ;;  %v3970_v12 = vld [vmem:[#allocation5 + $0x58c] sm:$0xf0]  ;;  %v223_v15 = vunpack.c.h.b16 %v80_v3  ;;  %966 = vmatpush.bf16.msrb.mxu2 %v3028_v4  ;;  %v83_v3 = vld [vmem:[#allocation2 + $0x18] sm:$0xff] }
  0x42   :  { %v2955_v7 = vld [vmem:[#allocation5 + $0x580] sm:$0xf]  ;;  %v3986_v14 = vld [vmem:[#allocation5 + $0x68c] sm:$0xf0]  ;;  %v2892_v21 = vor.u32 %v3954_v6, %v2891_v5  ;;  %979 = vmatpush.bf16.msrb.mxu3 %v3092_v11 }
  0x43   :  { %v3019_v13 = vld [vmem:[#allocation5 + $0x680] sm:$0xf]  ;;  %v4002_v17 = vld [vmem:[#allocation5 + $0x78c] sm:$0xf0]  ;;  %v4391_v19 = vpack.c.b16 %v222_v9, %v222_v9  ;;  %v4395_v22 = vpack.c.b16 %v223_v15, %v223_v15  ;;  %v2956_v23 = vor.u32 %v3970_v12, %v2955_v7  ;;  %v2661_v9 = vld [vmem:[#allocation5 + $0xf0] sm:$0xf0]  ;;  %v228_v15 = vunpack.c.l.b16 %v83_v3 }
  0x44   :  { %v3083_v16 = vld [vmem:[#allocation5 + $0x780] sm:$0xf]  ;;  %v3020_v24 = vor.u32 %v3986_v14, %v3019_v13  ;;  %v3952_v26 = vld [vmem:[#allocation5 + $0x46c] sm:$0xf0]  ;;  %941 = vmatpush.bf16.msrb.mxu0 %v2892_v21  ;;  %v2725_v12 = vld [vmem:[#allocation5 + $0x1f0] sm:$0xf0] }
  0x45   :  { %v2883_v25 = vld [vmem:[#allocation5 + $0x460] sm:$0xf]  ;;  %v3084_v28 = vor.u32 %v4002_v17, %v3083_v16  ;;  %v3968_v29 = vld [vmem:[#allocation5 + $0x56c] sm:$0xf0]  ;;  %894 = vmatmul.bf16.vlgmr.msra.gmra.mxu0 %v4391_v19  ;;  %907 = vmatmul.bf16.vlgmr.msra.gmra.mxu1 %v4395_v22  ;;  %v3927_v13 = vld [vmem:[#allocation5 + $0x2e4] sm:$0xf] }
  0x46   :  { %v2947_v27 = vld [vmem:[#allocation5 + $0x560] sm:$0xf]  ;;  %v3984_v31 = vld [vmem:[#allocation5 + $0x66c] sm:$0xf0]  ;;  %v2884_v34 = vor.u32 %v3952_v26, %v2883_v25  ;;  %954 = vmatpush.bf16.msrb.mxu1 %v2956_v23  ;;  %967 = vmatpush.bf16.msrb.mxu2 %v3020_v24  ;;  %v2789_v14 = vld [vmem:[#allocation5 + $0x2f0] sm:$0xf0]  ;;  %v229_v25 = vunpack.c.h.b16 %v83_v3 }
  0x47   :  { %v3011_v30 = vld [vmem:[#allocation5 + $0x660] sm:$0xf]  ;;  %v4000_v33 = vld [vmem:[#allocation5 + $0x76c] sm:$0xf0]  ;;  %v2948_v35 = vor.u32 %v3968_v29, %v2947_v27  ;;  %980 = vmatpush.bf16.msrb.mxu3 %v3084_v28  ;;  %v3943_v21 = vld [vmem:[#allocation5 + $0x3e4] sm:$0xf]  ;;  %v2664_v27 = vor.u32 %v3895_v8, %v2661_v9  ;;  %v2728_v29 = vor.u32 %v3911_v10, %v2725_v12 }
  0x48   :  { %v3075_v32 = vld [vmem:[#allocation5 + $0x760] sm:$0xf]  ;;  %v3012_v36 = vor.u32 %v3984_v31, %v3011_v30  ;;  %v3950_v38 = vld [vmem:[#allocation5 + $0x44c] sm:$0xf0]  ;;  %942 = vmatpush.bf16.msrb.mxu0 %v2884_v34  ;;  %v2853_v23 = vld [vmem:[#allocation5 + $0x3f0] sm:$0xf0]  ;;  %v2792_v30 = vor.u32 %v3927_v13, %v2789_v14 }
  0x49   :  { %v2875_v37 = vld [vmem:[#allocation5 + $0x440] sm:$0xf]  ;;  %v3076_v40 = vor.u32 %v4000_v33, %v3075_v32  ;;  %v3966_v41 = vld [vmem:[#allocation5 + $0x54c] sm:$0xf0]  ;;  %v3893_v31 = vld [vmem:[#allocation5 + $0xc4] sm:$0xf]  ;;  %v2856_v34 = vor.u32 %v3943_v21, %v2853_v23 }
  0x4a   :  { %v2939_v39 = vld [vmem:[#allocation5 + $0x540] sm:$0xf]  ;;  %v3982_v43 = vld [vmem:[#allocation5 + $0x64c] sm:$0xf0]  ;;  %v2876_v46 = vor.u32 %v3950_v38, %v2875_v37  ;;  %955 = vmatpush.bf16.msrb.mxu1 %v2948_v35  ;;  %968 = vmatpush.bf16.msrb.mxu2 %v3012_v36  ;;  %v2653_v32 = vld [vmem:[#allocation5 + $0xd0] sm:$0xf0]  ;;  %v4401_v38 = vpack.c.b16 %v228_v15, %v228_v15 }
  0x4b   :  { %v3003_v42 = vld [vmem:[#allocation5 + $0x640] sm:$0xf]  ;;  %v3998_v45 = vld [vmem:[#allocation5 + $0x74c] sm:$0xf0]  ;;  %v2940_v47 = vor.u32 %v3966_v41, %v2939_v39  ;;  %981 = vmatpush.bf16.msrb.mxu3 %v3076_v40  ;;  %v3909_v33 = vld [vmem:[#allocation5 + $0x1c4] sm:$0xf] }
  0x4c   :  { %v3067_v44 = vld [vmem:[#allocation5 + $0x740] sm:$0xf]  ;;  %v3004_v48 = vor.u32 %v3982_v43, %v3003_v42  ;;  %v3948_v50 = vld [vmem:[#allocation5 + $0x42c] sm:$0xf0]  ;;  %943 = vmatpush.bf16.msrb.mxu0 %v2876_v46  ;;  %v2717_v35 = vld [vmem:[#allocation5 + $0x1d0] sm:$0xf0]  ;;  %v4405_v42 = vpack.c.b16 %v229_v25, %v229_v25  ;;  %v2656_v43 = vor.u32 %v3893_v31, %v2653_v32 }
  0x4d   :  { %v2867_v49 = vld [vmem:[#allocation5 + $0x420] sm:$0xf]  ;;  %v3068_v52 = vor.u32 %v3998_v45, %v3067_v44  ;;  %v3964_v53 = vld [vmem:[#allocation5 + $0x52c] sm:$0xf0]  ;;  %v3925_v36 = vld [vmem:[#allocation5 + $0x2c4] sm:$0xf]  ;;  %v2720_v45 = vor.u32 %v3909_v33, %v2717_v35 }
  0x4e   :  { %v2931_v51 = vld [vmem:[#allocation5 + $0x520] sm:$0xf]  ;;  %v3980_v55 = vld [vmem:[#allocation5 + $0x62c] sm:$0xf0]  ;;  %v2868_v59 = vor.u32 %v3948_v50, %v2867_v49  ;;  %956 = vmatpush.bf16.msrb.mxu1 %v2940_v47  ;;  %969 = vmatpush.bf16.msrb.mxu2 %v3004_v48  ;;  %v2781_v37 = vld [vmem:[#allocation5 + $0x2d0] sm:$0xf0] }
  0x4f   :  { %v2995_v54 = vld [vmem:[#allocation5 + $0x620] sm:$0xf]  ;;  %v3996_v57 = vld [vmem:[#allocation5 + $0x72c] sm:$0xf0]  ;;  %v2932_v63 = vor.u32 %v3964_v53, %v2931_v51  ;;  %982 = vmatpush.bf16.msrb.mxu3 %v3068_v52  ;;  %v3941_v39 = vld [vmem:[#allocation5 + $0x3c4] sm:$0xf]  ;;  %v2784_v46 = vor.u32 %v3925_v36, %v2781_v37 }
  0x50   :  { %v3059_v56 = vld [vmem:[#allocation5 + $0x720] sm:$0xf]  ;;  %v3946_v60 = vld [vmem:[#allocation5 + $0x40c] sm:$0xf0]  ;;  %v2996_v0 = vor.u32 %v3980_v55, %v2995_v54  ;;  %944 = vmatpush.bf16.msrb.mxu0 %v2868_v59  ;;  %v2845_v40 = vld [vmem:[#allocation5 + $0x3d0] sm:$0xf0] }
  0x51   :  { %v2859_v58 = vld [vmem:[#allocation5 + $0x400] sm:$0xf]  ;;  %v3962_v62 = vld [vmem:[#allocation5 + $0x50c] sm:$0xf0]  ;;  %v3060_v4 = vor.u32 %v3996_v57, %v3059_v56  ;;  %v3891_v47 = vld [vmem:[#allocation5 + $0xa4] sm:$0xf]  ;;  %v2848_v50 = vor.u32 %v3941_v39, %v2845_v40 }
  0x52   :  { %v2923_v61 = vld [vmem:[#allocation5 + $0x500] sm:$0xf]  ;;  %v3978_v2 = vld [vmem:[#allocation5 + $0x60c] sm:$0xf0]  ;;  %v2860_v11 = vor.u32 %v3946_v60, %v2859_v58  ;;  %957 = vmatpush.bf16.msrb.mxu1 %v2932_v63  ;;  %970 = vmatpush.bf16.msrb.mxu2 %v2996_v0  ;;  %v2645_v48 = vld [vmem:[#allocation5 + $0xb0] sm:$0xf0] }
  0x53   :  { %v2987_v1 = vld [vmem:[#allocation5 + $0x600] sm:$0xf]  ;;  %v3994_v6 = vld [vmem:[#allocation5 + $0x70c] sm:$0xf0]  ;;  %v2924_v16 = vor.u32 %v3962_v62, %v2923_v61  ;;  %983 = vmatpush.bf16.msrb.mxu3 %v3060_v4  ;;  %v3907_v49 = vld [vmem:[#allocation5 + $0x1a4] sm:$0xf]  ;;  %v2648_v56 = vor.u32 %v3891_v47, %v2645_v48 }
  0x54   :  { %v3051_v5 = vld [vmem:[#allocation5 + $0x700] sm:$0xf]  ;;  %v82_v7 = vld [vmem:[#allocation2 + $0x10] sm:$0xff]  ;;  %v2988_v17 = vor.u32 %v3978_v2, %v2987_v1  ;;  %945 = vmatpush.bf16.msrb.mxu0 %v2860_v11  ;;  %v3923_v52 = vld [vmem:[#allocation5 + $0x2a4] sm:$0xf] }
  0x55   :  { %v226_v24 = vunpack.c.l.b16 %v82_v7  ;;  %v3052_v26 = vor.u32 %v3994_v6, %v3051_v5  ;;  %v227_v28 = vunpack.c.h.b16 %v82_v7  ;;  %v2709_v51 = vld [vmem:[#allocation5 + $0x1b0] sm:$0xf0]  ;;  %v3939_v54 = vld [vmem:[#allocation5 + $0x3a4] sm:$0xf] }
  0x56   :  { %958 = vmatpush.bf16.msrb.mxu1 %v2924_v16  ;;  %971 = vmatpush.bf16.msrb.mxu2 %v2988_v17  ;;  %v2773_v53 = vld [vmem:[#allocation5 + $0x2b0] sm:$0xf0]  ;;  %v2712_v57 = vor.u32 %v3907_v49, %v2709_v51  ;;  %v3889_v59 = vld [vmem:[#allocation5 + $0x84] sm:$0xf] }
  0x57   :  { %v4403_v41 = vpack.c.b16 %v226_v24, %v226_v24  ;;  %984 = vmatpush.bf16.msrb.mxu3 %v3052_v26  ;;  %v4407_v44 = vpack.c.b16 %v227_v28, %v227_v28  ;;  %v2837_v55 = vld [vmem:[#allocation5 + $0x3b0] sm:$0xf0]  ;;  %v2776_v58 = vor.u32 %v3923_v52, %v2773_v53  ;;  %v3905_v61 = vld [vmem:[#allocation5 + $0x184] sm:$0xf] }
  0x58   :  { %990 = vmatpush.bf16.msra.mxu0 %v2664_v27  ;;  %v2637_v60 = vld [vmem:[#allocation5 + $0x90] sm:$0xf0]  ;;  %v2840_v62 = vor.u32 %v3939_v54, %v2837_v55  ;;  %v3921_v0 = vld [vmem:[#allocation5 + $0x284] sm:$0xf] }
  0x59   :  { %972 = vmatmul.bf16.vlgmr.msrb.gmra.mxu2 %v4401_v38  ;;  %946 = vmatmul.bf16.vlgmr.msrb.gmra.mxu0 %v4403_v41  ;;  %v2701_v63 = vld [vmem:[#allocation5 + $0x190] sm:$0xf0]  ;;  %v3937_v2 = vld [vmem:[#allocation5 + $0x384] sm:$0xf]  ;;  %v2640_v4 = vor.u32 %v3889_v59, %v2637_v60 }
  0x5a   :  { %1003 = vmatpush.bf16.msra.mxu1 %v2728_v29  ;;  %1016 = vmatpush.bf16.msra.mxu2 %v2792_v30  ;;  %v2765_v1 = vld [vmem:[#allocation5 + $0x290] sm:$0xf0]  ;;  %v2704_v5 = vor.u32 %v3905_v61, %v2701_v63  ;;  %v3887_v7 = vld [vmem:[#allocation5 + $0x64] sm:$0xf] }
  0x5b   :  { %1029 = vmatpush.bf16.msra.mxu3 %v2856_v34  ;;  %959 = vmatmul.bf16.vlgmr.msrb.gmra.mxu1 %v4407_v44  ;;  %v2829_v3 = vld [vmem:[#allocation5 + $0x390] sm:$0xf0]  ;;  %v2768_v6 = vor.u32 %v3921_v0, %v2765_v1  ;;  %v3903_v9 = vld [vmem:[#allocation5 + $0x164] sm:$0xf] }
  0x5c   :  { %985 = vmatmul.bf16.vlgmr.msrb.gmra.mxu3 %v4405_v42  ;;  %991 = vmatpush.bf16.msra.mxu0 %v2656_v43  ;;  %v2629_v8 = vld [vmem:[#allocation5 + $0x70] sm:$0xf0]  ;;  %v2832_v10 = vor.u32 %v3937_v2, %v2829_v3  ;;  %v3919_v12 = vld [vmem:[#allocation5 + $0x264] sm:$0xf] }
  0x5d   :  { %v2693_v11 = vld [vmem:[#allocation5 + $0x170] sm:$0xf0]  ;;  %v3935_v14 = vld [vmem:[#allocation5 + $0x364] sm:$0xf]  ;;  %v2632_v16 = vor.u32 %v3887_v7, %v2629_v8 }
  0x5e   :  { %1004 = vmatpush.bf16.msra.mxu1 %v2720_v45  ;;  %1017 = vmatpush.bf16.msra.mxu2 %v2784_v46  ;;  %v2757_v13 = vld [vmem:[#allocation5 + $0x270] sm:$0xf0]  ;;  %v2696_v17 = vor.u32 %v3903_v9, %v2693_v11  ;;  %v3885_v23 = vld [vmem:[#allocation5 + $0x44] sm:$0xf] }
  0x5f   :  { %1030 = vmatpush.bf16.msra.mxu3 %v2848_v50  ;;  %v2821_v15 = vld [vmem:[#allocation5 + $0x370] sm:$0xf0]  ;;  %v2760_v21 = vor.u32 %v3919_v12, %v2757_v13  ;;  %v3901_v25 = vld [vmem:[#allocation5 + $0x144] sm:$0xf] }
  0x60   :  { %992 = vmatpush.bf16.msra.mxu0 %v2648_v56  ;;  %v2621_v24 = vld [vmem:[#allocation5 + $0x50] sm:$0xf0]  ;;  %v2824_v26 = vor.u32 %v3935_v14, %v2821_v15  ;;  %v3917_v28 = vld [vmem:[#allocation5 + $0x244] sm:$0xf] }
  0x61   :  { %v2685_v27 = vld [vmem:[#allocation5 + $0x150] sm:$0xf0]  ;;  %v3933_v30 = vld [vmem:[#allocation5 + $0x344] sm:$0xf]  ;;  %v2624_v32 = vor.u32 %v3885_v23, %v2621_v24 }
  0x62   :  { %1005 = vmatpush.bf16.msra.mxu1 %v2712_v57  ;;  %1018 = vmatpush.bf16.msra.mxu2 %v2776_v58  ;;  %v2749_v29 = vld [vmem:[#allocation5 + $0x250] sm:$0xf0]  ;;  %v2688_v33 = vor.u32 %v3901_v25, %v2685_v27  ;;  %v3883_v35 = vld [vmem:[#allocation5 + $0x24] sm:$0xf] }
  0x63   :  { %1031 = vmatpush.bf16.msra.mxu3 %v2840_v62  ;;  %v2813_v31 = vld [vmem:[#allocation5 + $0x350] sm:$0xf0]  ;;  %v2752_v34 = vor.u32 %v3917_v28, %v2749_v29  ;;  %v3899_v37 = vld [vmem:[#allocation5 + $0x124] sm:$0xf] }
  0x64   :  { %993 = vmatpush.bf16.msra.mxu0 %v2640_v4  ;;  %v2613_v36 = vld [vmem:[#allocation5 + $0x30] sm:$0xf0]  ;;  %v2816_v39 = vor.u32 %v3933_v30, %v2813_v31  ;;  %v3915_v43 = vld [vmem:[#allocation5 + $0x224] sm:$0xf] }
  0x65   :  { %v2677_v40 = vld [vmem:[#allocation5 + $0x130] sm:$0xf0]  ;;  %v3931_v46 = vld [vmem:[#allocation5 + $0x324] sm:$0xf]  ;;  %v2616_v48 = vor.u32 %v3883_v35, %v2613_v36 }
  0x66   :  { %1006 = vmatpush.bf16.msra.mxu1 %v2704_v5  ;;  %1019 = vmatpush.bf16.msra.mxu2 %v2768_v6  ;;  %v2741_v45 = vld [vmem:[#allocation5 + $0x230] sm:$0xf0]  ;;  %v3881_v49 = vld [vmem:[#allocation5 + $0x4] sm:$0xf]  ;;  %v2680_v51 = vor.u32 %v3899_v37, %v2677_v40 }
  0x67   :  { %1032 = vmatpush.bf16.msra.mxu3 %v2832_v10  ;;  %v2805_v47 = vld [vmem:[#allocation5 + $0x330] sm:$0xf0]  ;;  %v2744_v52 = vor.u32 %v3915_v43, %v2741_v45  ;;  %v3897_v53 = vld [vmem:[#allocation5 + $0x104] sm:$0xf] }
  0x68   :  { %994 = vmatpush.bf16.msra.mxu0 %v2632_v16  ;;  %v2605_v50 = vld [vmem:[#allocation5 + $0x10] sm:$0xf0]  ;;  %v3913_v55 = vld [vmem:[#allocation5 + $0x204] sm:$0xf]  ;;  %v2808_v56 = vor.u32 %v3931_v46, %v2805_v47 }
  0x69   :  { %v2669_v54 = vld [vmem:[#allocation5 + $0x110] sm:$0xf0]  ;;  %v3929_v58 = vld [vmem:[#allocation5 + $0x304] sm:$0xf]  ;;  %v2608_v63 = vor.u32 %v3881_v49, %v2605_v50 }
  0x6a   :  { %1007 = vmatpush.bf16.msra.mxu1 %v2696_v17  ;;  %1020 = vmatpush.bf16.msra.mxu2 %v2760_v21  ;;  %v2733_v57 = vld [vmem:[#allocation5 + $0x210] sm:$0xf0]  ;;  %v3959_v60 = vld [vmem:[#allocation5 + $0x4e4] sm:$0xf]  ;;  %v2672_v3 = vor.u32 %v3897_v53, %v2669_v54 }
  0x6b   :  { %1033 = vmatpush.bf16.msra.mxu3 %v2824_v26  ;;  %v2797_v59 = vld [vmem:[#allocation5 + $0x310] sm:$0xf0]  ;;  %v3975_v62 = vld [vmem:[#allocation5 + $0x5e4] sm:$0xf]  ;;  %v2736_v4 = vor.u32 %v3913_v55, %v2733_v57 }
  0x6c   :  { %995 = vmatpush.bf16.msra.mxu0 %v2624_v32  ;;  %v2917_v61 = vld [vmem:[#allocation5 + $0x4f0] sm:$0xf0]  ;;  %v3991_v1 = vld [vmem:[#allocation5 + $0x6e4] sm:$0xf]  ;;  %v2800_v7 = vor.u32 %v3929_v58, %v2797_v59 }
  0x6d   :  { %v2981_v0 = vld [vmem:[#allocation5 + $0x5f0] sm:$0xf0]  ;;  %v4007_v5 = vld [vmem:[#allocation5 + $0x7e4] sm:$0xf]  ;;  %v2920_v8 = vor.u32 %v3959_v60, %v2917_v61 }
  0x6e   :  { %1008 = vmatpush.bf16.msra.mxu1 %v2688_v33  ;;  %1021 = vmatpush.bf16.msra.mxu2 %v2752_v34  ;;  %v3045_v2 = vld [vmem:[#allocation5 + $0x6f0] sm:$0xf0]  ;;  %v2984_v9 = vor.u32 %v3975_v62, %v2981_v0  ;;  %v3957_v11 = vld [vmem:[#allocation5 + $0x4c4] sm:$0xf] }
  0x6f   :  { %1034 = vmatpush.bf16.msra.mxu3 %v2816_v39  ;;  %v3109_v6 = vld [vmem:[#allocation5 + $0x7f0] sm:$0xf0]  ;;  %v3048_v10 = vor.u32 %v3991_v1, %v3045_v2  ;;  %v3973_v13 = vld [vmem:[#allocation5 + $0x5c4] sm:$0xf] }
  0x70   :  { %996 = vmatpush.bf16.msra.mxu0 %v2616_v48  ;;  %v2909_v12 = vld [vmem:[#allocation5 + $0x4d0] sm:$0xf0]  ;;  %v3112_v14 = vor.u32 %v4007_v5, %v3109_v6  ;;  %v3989_v16 = vld [vmem:[#allocation5 + $0x6c4] sm:$0xf] }
  0x71   :  { %v2973_v15 = vld [vmem:[#allocation5 + $0x5d0] sm:$0xf0]  ;;  %v4005_v21 = vld [vmem:[#allocation5 + $0x7c4] sm:$0xf]  ;;  %v2912_v24 = vor.u32 %v3957_v11, %v2909_v12 }
  0x72   :  { %1009 = vmatpush.bf16.msra.mxu1 %v2680_v51  ;;  %1022 = vmatpush.bf16.msra.mxu2 %v2744_v52  ;;  %v3037_v17 = vld [vmem:[#allocation5 + $0x6d0] sm:$0xf0]  ;;  %v2976_v25 = vor.u32 %v3973_v13, %v2973_v15  ;;  %v3955_v27 = vld [vmem:[#allocation5 + $0x4a4] sm:$0xf] }
  0x73   :  { %1035 = vmatpush.bf16.msra.mxu3 %v2808_v56  ;;  %v3101_v23 = vld [vmem:[#allocation5 + $0x7d0] sm:$0xf0]  ;;  %v3040_v26 = vor.u32 %v3989_v16, %v3037_v17  ;;  %v3971_v29 = vld [vmem:[#allocation5 + $0x5a4] sm:$0xf] }
  0x74   :  { %997 = vmatpush.bf16.msra.mxu0 %v2608_v63  ;;  %v2901_v28 = vld [vmem:[#allocation5 + $0x4b0] sm:$0xf0]  ;;  %v3104_v30 = vor.u32 %v4005_v21, %v3101_v23  ;;  %v3987_v32 = vld [vmem:[#allocation5 + $0x6a4] sm:$0xf] }
  0x75   :  { %v2965_v31 = vld [vmem:[#allocation5 + $0x5b0] sm:$0xf0]  ;;  %v4003_v34 = vld [vmem:[#allocation5 + $0x7a4] sm:$0xf]  ;;  %v2904_v36 = vor.u32 %v3955_v27, %v2901_v28 }
  0x76   :  { %1010 = vmatpush.bf16.msra.mxu1 %v2672_v3  ;;  %1023 = vmatpush.bf16.msra.mxu2 %v2736_v4  ;;  %v3029_v33 = vld [vmem:[#allocation5 + $0x6b0] sm:$0xf0]  ;;  %v2968_v37 = vor.u32 %v3971_v29, %v2965_v31  ;;  %v3953_v40 = vld [vmem:[#allocation5 + $0x484] sm:$0xf] }
  0x77   :  { %1036 = vmatpush.bf16.msra.mxu3 %v2800_v7  ;;  %v3093_v35 = vld [vmem:[#allocation5 + $0x7b0] sm:$0xf0]  ;;  %998 = vmatmul.bf16.vlgmr.msra.gmra.mxu0 %v4391_v19  ;;  %v3032_v39 = vor.u32 %v3987_v32, %v3029_v33  ;;  %v3969_v45 = vld [vmem:[#allocation5 + $0x584] sm:$0xf] }
  0x78   :  { %1042 = vmatpush.bf16.msrb.mxu0 %v2920_v8  ;;  %v2893_v43 = vld [vmem:[#allocation5 + $0x490] sm:$0xf0]  ;;  %v3096_v46 = vor.u32 %v4003_v34, %v3093_v35  ;;  %v3985_v48 = vld [vmem:[#allocation5 + $0x684] sm:$0xf] }
  0x79   :  { %1024 = vmatmul.bf16.vlgmr.msra.gmra.mxu2 %v4389_v18  ;;  %1011 = vmatmul.bf16.vlgmr.msra.gmra.mxu1 %v4395_v22  ;;  %v2957_v47 = vld [vmem:[#allocation5 + $0x590] sm:$0xf0]  ;;  %v4001_v50 = vld [vmem:[#allocation5 + $0x784] sm:$0xf]  ;;  %v2896_v52 = vor.u32 %v3953_v40, %v2893_v43  ;;  %v3171_v43 = vld [vmem:[#allocation5 + $0xe8] sm:$0xf] }
  0x7a   :  { %1055 = vmatpush.bf16.msrb.mxu1 %v2984_v9  ;;  %1068 = vmatpush.bf16.msrb.mxu2 %v3048_v10  ;;  %v3021_v49 = vld [vmem:[#allocation5 + $0x690] sm:$0xf0]  ;;  %v2960_v53 = vor.u32 %v3969_v45, %v2957_v47  ;;  %v3951_v55 = vld [vmem:[#allocation5 + $0x464] sm:$0xf]  ;;  %v4056_v45 = vld [vmem:[#allocation5 + $0xf4] sm:$0xf0] }
  0x7b   :  { %1081 = vmatpush.bf16.msrb.mxu3 %v3112_v14  ;;  %v3085_v51 = vld [vmem:[#allocation5 + $0x790] sm:$0xf0]  ;;  %v3024_v54 = vor.u32 %v3985_v48, %v3021_v49  ;;  %v3967_v57 = vld [vmem:[#allocation5 + $0x564] sm:$0xf]  ;;  %v4072_v48 = vld [vmem:[#allocation5 + $0x1f4] sm:$0xf0] }
  0x7c   :  { %1037 = vmatmul.bf16.vlgmr.msra.gmra.mxu3 %v4393_v20  ;;  %1043 = vmatpush.bf16.msrb.mxu0 %v2912_v24  ;;  %v2885_v56 = vld [vmem:[#allocation5 + $0x470] sm:$0xf0]  ;;  %v3088_v58 = vor.u32 %v4001_v50, %v3085_v51  ;;  %v3983_v60 = vld [vmem:[#allocation5 + $0x664] sm:$0xf]  ;;  %v3299_v49 = vld [vmem:[#allocation5 + $0x2e8] sm:$0xf] }
  0x7d   :  { %v2949_v59 = vld [vmem:[#allocation5 + $0x570] sm:$0xf0]  ;;  %v3999_v62 = vld [vmem:[#allocation5 + $0x764] sm:$0xf]  ;;  %v2888_v0 = vor.u32 %v3951_v55, %v2885_v56  ;;  %v4088_v50 = vld [vmem:[#allocation5 + $0x2f4] sm:$0xf0]  ;;  %v3172_v56 = vor.u32 %v4056_v45, %v3171_v43 }
  0x7e   :  { %1056 = vmatpush.bf16.msrb.mxu1 %v2976_v25  ;;  %1069 = vmatpush.bf16.msrb.mxu2 %v3040_v26  ;;  %v3013_v61 = vld [vmem:[#allocation5 + $0x670] sm:$0xf0]  ;;  %v2952_v1 = vor.u32 %v3967_v57, %v2949_v59  ;;  %v3949_v3 = vld [vmem:[#allocation5 + $0x444] sm:$0xf]  ;;  %v3163_v59 = vld [vmem:[#allocation5 + $0xc8] sm:$0xf] }
  0x7f   :  { %1082 = vmatpush.bf16.msrb.mxu3 %v3104_v30  ;;  %v3077_v63 = vld [vmem:[#allocation5 + $0x770] sm:$0xf0]  ;;  %v3016_v2 = vor.u32 %v3983_v60, %v3013_v61  ;;  %v3965_v5 = vld [vmem:[#allocation5 + $0x544] sm:$0xf]  ;;  %v4054_v60 = vld [vmem:[#allocation5 + $0xd4] sm:$0xf0] }
  0x80   :  { %1044 = vmatpush.bf16.msrb.mxu0 %v2904_v36  ;;  %v2877_v4 = vld [vmem:[#allocation5 + $0x450] sm:$0xf0]  ;;  %v3080_v6 = vor.u32 %v3999_v62, %v3077_v63  ;;  %v3981_v8 = vld [vmem:[#allocation5 + $0x644] sm:$0xf]  ;;  %v3227_v61 = vld [vmem:[#allocation5 + $0x1c8] sm:$0xf] }
  0x81   :  { %v2941_v7 = vld [vmem:[#allocation5 + $0x550] sm:$0xf0]  ;;  %v3997_v10 = vld [vmem:[#allocation5 + $0x744] sm:$0xf]  ;;  %v2880_v12 = vor.u32 %v3949_v3, %v2877_v4  ;;  %v4070_v63 = vld [vmem:[#allocation5 + $0x1d4] sm:$0xf0]  ;;  %v3164_v4 = vor.u32 %v4054_v60, %v3163_v59 }
  0x82   :  { %1057 = vmatpush.bf16.msrb.mxu1 %v2968_v37  ;;  %1070 = vmatpush.bf16.msrb.mxu2 %v3032_v39  ;;  %v3005_v9 = vld [vmem:[#allocation5 + $0x650] sm:$0xf0]  ;;  %v2944_v13 = vor.u32 %v3965_v5, %v2941_v7  ;;  %v3947_v15 = vld [vmem:[#allocation5 + $0x424] sm:$0xf]  ;;  %v4102_v3 = vld [vmem:[#allocation5 + $0x3d4] sm:$0xf0]  ;;  %v3228_v5 = vor.u32 %v4070_v63, %v3227_v61 }
  0x83   :  { %1083 = vmatpush.bf16.msrb.mxu3 %v3096_v46  ;;  %v3069_v11 = vld [vmem:[#allocation5 + $0x750] sm:$0xf0]  ;;  %v3008_v14 = vor.u32 %v3981_v8, %v3005_v9  ;;  %v3963_v17 = vld [vmem:[#allocation5 + $0x524] sm:$0xf]  ;;  %v3235_v46 = vld [vmem:[#allocation5 + $0x1e8] sm:$0xf] }
  0x84   :  { %1045 = vmatpush.bf16.msrb.mxu0 %v2896_v52  ;;  %v2869_v16 = vld [vmem:[#allocation5 + $0x430] sm:$0xf0]  ;;  %v3072_v21 = vor.u32 %v3997_v10, %v3069_v11  ;;  %v3979_v24 = vld [vmem:[#allocation5 + $0x624] sm:$0xf]  ;;  %v3236_v57 = vor.u32 %v4072_v48, %v3235_v46  ;;  %v3155_v7 = vld [vmem:[#allocation5 + $0xa8] sm:$0xf] }
  0x85   :  { %v2933_v23 = vld [vmem:[#allocation5 + $0x530] sm:$0xf0]  ;;  %v3995_v26 = vld [vmem:[#allocation5 + $0x724] sm:$0xf]  ;;  %v2872_v28 = vor.u32 %v3947_v15, %v2869_v16  ;;  %v4052_v8 = vld [vmem:[#allocation5 + $0xb4] sm:$0xf0] }
  0x86   :  { %1058 = vmatpush.bf16.msrb.mxu1 %v2960_v53  ;;  %1071 = vmatpush.bf16.msrb.mxu2 %v3024_v54  ;;  %v2997_v25 = vld [vmem:[#allocation5 + $0x630] sm:$0xf0]  ;;  %v3945_v29 = vld [vmem:[#allocation5 + $0x404] sm:$0xf]  ;;  %v2936_v31 = vor.u32 %v3963_v17, %v2933_v23  ;;  %v3363_v53 = vld [vmem:[#allocation5 + $0x3e8] sm:$0xf]  ;;  %v3156_v16 = vor.u32 %v4052_v8, %v3155_v7 }
  0x87   :  { %1084 = vmatpush.bf16.msrb.mxu3 %v3088_v58  ;;  %v3061_v27 = vld [vmem:[#allocation5 + $0x730] sm:$0xf0]  ;;  %v3000_v32 = vor.u32 %v3979_v24, %v2997_v25  ;;  %v3961_v33 = vld [vmem:[#allocation5 + $0x504] sm:$0xf]  ;;  %v4104_v54 = vld [vmem:[#allocation5 + $0x3f4] sm:$0xf0]  ;;  %v3300_v58 = vor.u32 %v4088_v50, %v3299_v49 }
  0x88   :  { %1046 = vmatpush.bf16.msrb.mxu0 %v2888_v0  ;;  %v2861_v30 = vld [vmem:[#allocation5 + $0x410] sm:$0xf0]  ;;  %v3977_v35 = vld [vmem:[#allocation5 + $0x604] sm:$0xf]  ;;  %v3064_v36 = vor.u32 %v3995_v26, %v3061_v27  ;;  %v3364_v62 = vor.u32 %v4104_v54, %v3363_v53  ;;  %v3291_v0 = vld [vmem:[#allocation5 + $0x2c8] sm:$0xf] }
  0x89   :  { %v2925_v34 = vld [vmem:[#allocation5 + $0x510] sm:$0xf0]  ;;  %v3993_v39 = vld [vmem:[#allocation5 + $0x704] sm:$0xf]  ;;  %v2864_v47 = vor.u32 %v3945_v29, %v2861_v30  ;;  %v3219_v9 = vld [vmem:[#allocation5 + $0x1a8] sm:$0xf] }
  0x8a   :  { %1059 = vmatpush.bf16.msrb.mxu1 %v2952_v1  ;;  %1072 = vmatpush.bf16.msrb.mxu2 %v3016_v2  ;;  %v2989_v37 = vld [vmem:[#allocation5 + $0x610] sm:$0xf0]  ;;  %v2928_v51 = vor.u32 %v3961_v33, %v2925_v34  ;;  %v4086_v1 = vld [vmem:[#allocation5 + $0x2d4] sm:$0xf0]  ;;  %v3355_v2 = vld [vmem:[#allocation5 + $0x3c8] sm:$0xf] }
  0x8b   :  { %1085 = vmatpush.bf16.msrb.mxu3 %v3080_v6  ;;  %v3053_v40 = vld [vmem:[#allocation5 + $0x710] sm:$0xf0]  ;;  %v2992_v52 = vor.u32 %v3977_v35, %v2989_v37  ;;  %v3292_v6 = vor.u32 %v4086_v1, %v3291_v0  ;;  %v3356_v10 = vor.u32 %v4102_v3, %v3355_v2  ;;  %v4068_v11 = vld [vmem:[#allocation5 + $0x1b4] sm:$0xf0]  ;;  %v3147_v23 = vld [vmem:[#allocation5 + $0x88] sm:$0xf] }
  0x8c   :  { %1047 = vmatpush.bf16.msrb.mxu0 %v2880_v12  ;;  %v3056_v55 = vor.u32 %v3993_v39, %v3053_v40  ;;  %v3283_v12 = vld [vmem:[#allocation5 + $0x2a8] sm:$0xf]  ;;  %v4100_v15 = vld [vmem:[#allocation5 + $0x3b4] sm:$0xf0]  ;;  %v3220_v17 = vor.u32 %v4068_v11, %v3219_v9 }
  0x8d   :  { %v4050_v24 = vld [vmem:[#allocation5 + $0x94] sm:$0xf0]  ;;  %v3211_v25 = vld [vmem:[#allocation5 + $0x188] sm:$0xf] }
  0x8e   :  { %1060 = vmatpush.bf16.msrb.mxu1 %v2944_v13  ;;  %1073 = vmatpush.bf16.msrb.mxu2 %v3008_v14  ;;  %v4084_v13 = vld [vmem:[#allocation5 + $0x2b4] sm:$0xf0]  ;;  %v3347_v14 = vld [vmem:[#allocation5 + $0x3a8] sm:$0xf] }
  0x8f   :  { %1086 = vmatpush.bf16.msrb.mxu3 %v3072_v21  ;;  %v3284_v21 = vor.u32 %v4084_v13, %v3283_v12  ;;  %v3348_v26 = vor.u32 %v4100_v15, %v3347_v14  ;;  %v4066_v27 = vld [vmem:[#allocation5 + $0x194] sm:$0xf0]  ;;  %v3339_v30 = vld [vmem:[#allocation5 + $0x388] sm:$0xf] }
  0x90   :  { %1048 = vmatpush.bf16.msrb.mxu0 %v2872_v28  ;;  %v3275_v28 = vld [vmem:[#allocation5 + $0x288] sm:$0xf]  ;;  %v4082_v29 = vld [vmem:[#allocation5 + $0x294] sm:$0xf0]  ;;  %v3212_v33 = vor.u32 %v4066_v27, %v3211_v25 }
  0x91   :  { %v3276_v34 = vor.u32 %v4082_v29, %v3275_v28  ;;  %v3139_v35 = vld [vmem:[#allocation5 + $0x68] sm:$0xf]  ;;  %v4064_v40 = vld [vmem:[#allocation5 + $0x174] sm:$0xf0] }
  0x92   :  { %1061 = vmatpush.bf16.msrb.mxu1 %v2936_v31  ;;  %1074 = vmatpush.bf16.msrb.mxu2 %v3000_v32  ;;  %v4098_v31 = vld [vmem:[#allocation5 + $0x394] sm:$0xf0]  ;;  %v3148_v32 = vor.u32 %v4050_v24, %v3147_v23  ;;  %v3203_v37 = vld [vmem:[#allocation5 + $0x168] sm:$0xf] }
  0x93   :  { %1087 = vmatpush.bf16.msrb.mxu3 %v3064_v36  ;;  %v4048_v36 = vld [vmem:[#allocation5 + $0x74] sm:$0xf0]  ;;  %v3340_v39 = vor.u32 %v4098_v31, %v3339_v30  ;;  %v3267_v43 = vld [vmem:[#allocation5 + $0x268] sm:$0xf]  ;;  %v3204_v49 = vor.u32 %v4064_v40, %v3203_v37 }
  0x94   :  { %1049 = vmatpush.bf16.msrb.mxu0 %v2864_v47  ;;  %v4080_v45 = vld [vmem:[#allocation5 + $0x274] sm:$0xf0]  ;;  %v3331_v46 = vld [vmem:[#allocation5 + $0x368] sm:$0xf]  ;;  %v3140_v48 = vor.u32 %v4048_v36, %v3139_v35 }
  0x95   :  { %v4096_v47 = vld [vmem:[#allocation5 + $0x374] sm:$0xf0]  ;;  %v3268_v50 = vor.u32 %v4080_v45, %v3267_v43  ;;  %v3195_v53 = vld [vmem:[#allocation5 + $0x148] sm:$0xf] }
  0x96   :  { %1062 = vmatpush.bf16.msrb.mxu1 %v2928_v51  ;;  %1075 = vmatpush.bf16.msrb.mxu2 %v2992_v52  ;;  %v3131_v51 = vld [vmem:[#allocation5 + $0x48] sm:$0xf]  ;;  %v4046_v52 = vld [vmem:[#allocation5 + $0x54] sm:$0xf0]  ;;  %v3332_v54 = vor.u32 %v4096_v47, %v3331_v46 }
  0x97   :  { %1088 = vmatpush.bf16.msrb.mxu3 %v3056_v55  ;;  %1050 = vmatmul.bf16.vlgmr.msrb.gmra.mxu0 %v4403_v41  ;;  %v4062_v55 = vld [vmem:[#allocation5 + $0x154] sm:$0xf0]  ;;  %v3132_v60 = vor.u32 %v4046_v52, %v3131_v51  ;;  %v3123_v63 = vld [vmem:[#allocation5 + $0x28] sm:$0xf] }
  0x98   :  { %1904 = vmatpush.bf16.msra.mxu0 %v3172_v56  ;;  %v3259_v56 = vld [vmem:[#allocation5 + $0x248] sm:$0xf]  ;;  %v4094_v59 = vld [vmem:[#allocation5 + $0x354] sm:$0xf0]  ;;  %v3196_v61 = vor.u32 %v4062_v55, %v3195_v53 }
  0x99   :  { %1076 = vmatmul.bf16.vlgmr.msrb.gmra.mxu2 %v4401_v38  ;;  %1063 = vmatmul.bf16.vlgmr.msrb.gmra.mxu1 %v4407_v44  ;;  %v4044_v0 = vld [vmem:[#allocation5 + $0x34] sm:$0xf0]  ;;  %v3187_v1 = vld [vmem:[#allocation5 + $0x128] sm:$0xf] }
  0x9a   :  { %1917 = vmatpush.bf16.msra.mxu1 %v3236_v57  ;;  %1930 = vmatpush.bf16.msra.mxu2 %v3300_v58  ;;  %v4078_v57 = vld [vmem:[#allocation5 + $0x254] sm:$0xf0]  ;;  %v3323_v58 = vld [vmem:[#allocation5 + $0x348] sm:$0xf]  ;;  %v3124_v8 = vor.u32 %v4044_v0, %v3123_v63 }
  0x9b   :  { %1943 = vmatpush.bf16.msra.mxu3 %v3364_v62  ;;  %v3260_v62 = vor.u32 %v4078_v57, %v3259_v56  ;;  %v3324_v2 = vor.u32 %v4094_v59, %v3323_v58  ;;  %v4060_v3 = vld [vmem:[#allocation5 + $0x134] sm:$0xf0]  ;;  %v3115_v9 = vld [vmem:[#allocation5 + $0x8] sm:$0xf] }
  0x9c   :  { %1089 = vmatmul.bf16.vlgmr.msrb.gmra.mxu3 %v4405_v42  ;;  %1905 = vmatpush.bf16.msra.mxu0 %v3164_v4  ;;  %v3251_v4 = vld [vmem:[#allocation5 + $0x228] sm:$0xf]  ;;  %v4092_v7 = vld [vmem:[#allocation5 + $0x334] sm:$0xf0]  ;;  %v3188_v11 = vor.u32 %v4060_v3, %v3187_v1 }
  0x9d   :  { %v3179_v13 = vld [vmem:[#allocation5 + $0x108] sm:$0xf]  ;;  %v4058_v14 = vld [vmem:[#allocation5 + $0x114] sm:$0xf0] }
  0x9e   :  { %1918 = vmatpush.bf16.msra.mxu1 %v3228_v5  ;;  %1931 = vmatpush.bf16.msra.mxu2 %v3292_v6  ;;  %v4076_v5 = vld [vmem:[#allocation5 + $0x234] sm:$0xf0]  ;;  %v3315_v6 = vld [vmem:[#allocation5 + $0x328] sm:$0xf]  ;;  %v3180_v31 = vor.u32 %v4058_v14, %v3179_v13 }
  0x9f   :  { %1944 = vmatpush.bf16.msra.mxu3 %v3356_v10  ;;  %v4042_v10 = vld [vmem:[#allocation5 + $0x14] sm:$0xf0]  ;;  %v3252_v12 = vor.u32 %v4076_v5, %v3251_v4  ;;  %v3243_v15 = vld [vmem:[#allocation5 + $0x208] sm:$0xf] }
  0xa0   :  { %1906 = vmatpush.bf16.msra.mxu0 %v3156_v16  ;;  %v3316_v16 = vor.u32 %v4092_v7, %v3315_v6  ;;  %v4090_v23 = vld [vmem:[#allocation5 + $0x314] sm:$0xf0]  ;;  %v3427_v24 = vld [vmem:[#allocation5 + $0x4e8] sm:$0xf]  ;;  %v3116_v27 = vor.u32 %v4042_v10, %v3115_v9 }
  0xa1   :  { %v4120_v25 = vld [vmem:[#allocation5 + $0x4f4] sm:$0xf0]  ;;  %v3555_v29 = vld [vmem:[#allocation5 + $0x6e8] sm:$0xf] }
  0xa2   :  { %1919 = vmatpush.bf16.msra.mxu1 %v3220_v17  ;;  %1932 = vmatpush.bf16.msra.mxu2 %v3284_v21  ;;  %v4074_v17 = vld [vmem:[#allocation5 + $0x214] sm:$0xf0]  ;;  %v3307_v21 = vld [vmem:[#allocation5 + $0x308] sm:$0xf]  ;;  %v3428_v36 = vor.u32 %v4120_v25, %v3427_v24 }
  0xa3   :  { %1945 = vmatpush.bf16.msra.mxu3 %v3348_v26  ;;  %v3491_v26 = vld [vmem:[#allocation5 + $0x5e8] sm:$0xf]  ;;  %v4136_v28 = vld [vmem:[#allocation5 + $0x5f4] sm:$0xf0]  ;;  %v3308_v35 = vor.u32 %v4090_v23, %v3307_v21 }
  0xa4   :  { %1907 = vmatpush.bf16.msra.mxu0 %v3148_v32  ;;  %v4152_v30 = vld [vmem:[#allocation5 + $0x6f4] sm:$0xf0]  ;;  %v3244_v32 = vor.u32 %v4074_v17, %v3243_v15  ;;  %v3492_v37 = vor.u32 %v4136_v28, %v3491_v26  ;;  %v3419_v40 = vld [vmem:[#allocation5 + $0x4c8] sm:$0xf]  ;;  %v4425_v26 = vld [vmem:[#allocation7] sm:$0x3] }
  0xa5   :  { %v4118_v43 = vld [vmem:[#allocation5 + $0x4d4] sm:$0xf0]  ;;  %v3483_v45 = vld [vmem:[#allocation5 + $0x5c8] sm:$0xf] }
  0xa6   :  { %1920 = vmatpush.bf16.msra.mxu1 %v3212_v33  ;;  %1933 = vmatpush.bf16.msra.mxu2 %v3276_v34  ;;  %v3619_v33 = vld [vmem:[#allocation5 + $0x7e8] sm:$0xf]  ;;  %v4168_v34 = vld [vmem:[#allocation5 + $0x7f4] sm:$0xf0]  ;;  %v3420_v52 = vor.u32 %v4118_v43, %v3419_v40 }
  0xa7   :  { %1946 = vmatpush.bf16.msra.mxu3 %v3340_v39  ;;  %v3556_v39 = vor.u32 %v4152_v30, %v3555_v29  ;;  %v3620_v46 = vor.u32 %v4168_v34, %v3619_v33  ;;  %v4134_v47 = vld [vmem:[#allocation5 + $0x5d4] sm:$0xf0]  ;;  %v3411_v55 = vld [vmem:[#allocation5 + $0x4a8] sm:$0xf] }
  0xa8   :  { %1908 = vmatpush.bf16.msra.mxu0 %v3140_v48  ;;  %v3547_v48 = vld [vmem:[#allocation5 + $0x6c8] sm:$0xf]  ;;  %v4166_v51 = vld [vmem:[#allocation5 + $0x7d4] sm:$0xf0]  ;;  %v3484_v53 = vor.u32 %v4134_v47, %v3483_v45 }
  0xa9   :  { %v4116_v56 = vld [vmem:[#allocation5 + $0x4b4] sm:$0xf0]  ;;  %v3475_v57 = vld [vmem:[#allocation5 + $0x5a8] sm:$0xf] }
  0xaa   :  { %1921 = vmatpush.bf16.msra.mxu1 %v3204_v49  ;;  %1934 = vmatpush.bf16.msra.mxu2 %v3268_v50  ;;  %v4150_v49 = vld [vmem:[#allocation5 + $0x6d4] sm:$0xf0]  ;;  %v3611_v50 = vld [vmem:[#allocation5 + $0x7c8] sm:$0xf]  ;;  %v3412_v0 = vor.u32 %v4116_v56, %v3411_v55 }
  0xab   :  { %1947 = vmatpush.bf16.msra.mxu3 %v3332_v54  ;;  %v3548_v54 = vor.u32 %v4150_v49, %v3547_v48  ;;  %v3612_v58 = vor.u32 %v4166_v51, %v3611_v50  ;;  %v4132_v59 = vld [vmem:[#allocation5 + $0x5b4] sm:$0xf0]  ;;  %v3403_v3 = vld [vmem:[#allocation5 + $0x488] sm:$0xf] }
  0xac   :  { %1909 = vmatpush.bf16.msra.mxu0 %v3132_v60  ;;  %v3539_v60 = vld [vmem:[#allocation5 + $0x6a8] sm:$0xf]  ;;  %v4164_v63 = vld [vmem:[#allocation5 + $0x7b4] sm:$0xf0]  ;;  %v3476_v1 = vor.u32 %v4132_v59, %v3475_v57 }
  0xad   :  { %v4114_v4 = vld [vmem:[#allocation5 + $0x494] sm:$0xf0]  ;;  %v3467_v5 = vld [vmem:[#allocation5 + $0x588] sm:$0xf] }
  0xae   :  { %1922 = vmatpush.bf16.msra.mxu1 %v3196_v61  ;;  %1935 = vmatpush.bf16.msra.mxu2 %v3260_v62  ;;  %v4148_v61 = vld [vmem:[#allocation5 + $0x6b4] sm:$0xf0]  ;;  %v3603_v62 = vld [vmem:[#allocation5 + $0x7a8] sm:$0xf] }
  0xaf   :  { %1948 = vmatpush.bf16.msra.mxu3 %v3324_v2  ;;  %v3540_v2 = vor.u32 %v4148_v61, %v3539_v60  ;;  %v3604_v6 = vor.u32 %v4164_v63, %v3603_v62  ;;  %v4130_v7 = vld [vmem:[#allocation5 + $0x594] sm:$0xf0]  ;;  %v3595_v10 = vld [vmem:[#allocation5 + $0x788] sm:$0xf] }
  0xb0   :  { %1910 = vmatpush.bf16.msra.mxu0 %v3124_v8  ;;  %v3531_v8 = vld [vmem:[#allocation5 + $0x688] sm:$0xf]  ;;  %v4146_v9 = vld [vmem:[#allocation5 + $0x694] sm:$0xf0]  ;;  %v3468_v14 = vor.u32 %v4130_v7, %v3467_v5 }
  0xb1   :  { %v3395_v13 = vld [vmem:[#allocation5 + $0x468] sm:$0xf]  ;;  %v3532_v15 = vor.u32 %v4146_v9, %v3531_v8  ;;  %v4128_v21 = vld [vmem:[#allocation5 + $0x574] sm:$0xf0] }
  0xb2   :  { %1923 = vmatpush.bf16.msra.mxu1 %v3188_v11  ;;  %1936 = vmatpush.bf16.msra.mxu2 %v3252_v12  ;;  %v4162_v11 = vld [vmem:[#allocation5 + $0x794] sm:$0xf0]  ;;  %v3404_v12 = vor.u32 %v4114_v4, %v3403_v3  ;;  %v3459_v17 = vld [vmem:[#allocation5 + $0x568] sm:$0xf] }
  0xb3   :  { %1949 = vmatpush.bf16.msra.mxu3 %v3316_v16  ;;  %v4112_v16 = vld [vmem:[#allocation5 + $0x474] sm:$0xf0]  ;;  %v3596_v23 = vor.u32 %v4162_v11, %v3595_v10  ;;  %v3523_v24 = vld [vmem:[#allocation5 + $0x668] sm:$0xf] }
  0xb4   :  { %1911 = vmatpush.bf16.msra.mxu0 %v3116_v27  ;;  %v4144_v25 = vld [vmem:[#allocation5 + $0x674] sm:$0xf0]  ;;  %v3587_v27 = vld [vmem:[#allocation5 + $0x768] sm:$0xf]  ;;  %v3396_v29 = vor.u32 %v4112_v16, %v3395_v13  ;;  %v4055_v13 = vld [vmem:[#allocation5 + $0xec] sm:$0xf] }
  0xb5   :  { %v4160_v28 = vld [vmem:[#allocation5 + $0x774] sm:$0xf0]  ;;  %v3387_v30 = vld [vmem:[#allocation5 + $0x448] sm:$0xf] }
  0xb6   :  { %1924 = vmatpush.bf16.msra.mxu1 %v3180_v31  ;;  %1937 = vmatpush.bf16.msra.mxu2 %v3244_v32  ;;  %v3460_v31 = vor.u32 %v4128_v21, %v3459_v17  ;;  %v3524_v32 = vor.u32 %v4144_v25, %v3523_v24  ;;  %v4110_v33 = vld [vmem:[#allocation5 + $0x454] sm:$0xf0]  ;;  %v3451_v34 = vld [vmem:[#allocation5 + $0x548] sm:$0xf]  ;;  %v3237_v17 = vld [vmem:[#allocation5 + $0x1f8] sm:$0xf0] }
  0xb7   :  { %1950 = vmatpush.bf16.msra.mxu3 %v3308_v35  ;;  %1912 = vmatmul.bf16.vlgmr.msra.gmra.mxu0 %v4391_v19  ;;  %v214_v35 = vperm.slane %v4425_v26, 0  ;;  %v4142_v40 = vld [vmem:[#allocation5 + $0x654] sm:$0xf0]  ;;  %v3579_v43 = vld [vmem:[#allocation5 + $0x748] sm:$0xf] }
  0xb8   :  { %1956 = vmatpush.bf16.msrb.mxu0 %v3428_v36  ;;  %v3588_v36 = vor.u32 %v4160_v28, %v3587_v27  ;;  %v4158_v45 = vld [vmem:[#allocation5 + $0x754] sm:$0xf0]  ;;  %v3379_v50 = vld [vmem:[#allocation5 + $0x428] sm:$0xf]  ;;  %v4087_v21 = vld [vmem:[#allocation5 + $0x2ec] sm:$0xf] }
  0xb9   :  { %1938 = vmatmul.bf16.vlgmr.msra.gmra.mxu2 %v4389_v18  ;;  %1925 = vmatmul.bf16.vlgmr.msra.gmra.mxu1 %v4395_v22  ;;  %v4108_v51 = vld [vmem:[#allocation5 + $0x434] sm:$0xf0]  ;;  %v3580_v55 = vor.u32 %v4158_v45, %v3579_v43  ;;  %v3507_v57 = vld [vmem:[#allocation5 + $0x628] sm:$0xf]  ;;  %v3229_v43 = vld [vmem:[#allocation5 + $0x1d8] sm:$0xf0] }
  0xba   :  { %1969 = vmatpush.bf16.msrb.mxu1 %v3492_v37  ;;  %1982 = vmatpush.bf16.msrb.mxu2 %v3556_v39  ;;  %v4126_v37 = vld [vmem:[#allocation5 + $0x554] sm:$0xf0]  ;;  %v3515_v39 = vld [vmem:[#allocation5 + $0x648] sm:$0xf]  ;;  %v3380_v62 = vor.u32 %v4108_v51, %v3379_v50  ;;  %v4085_v45 = vld [vmem:[#allocation5 + $0x2cc] sm:$0xf] }
  0xbb   :  { %1995 = vmatpush.bf16.msrb.mxu3 %v3620_v46  ;;  %v3388_v46 = vor.u32 %v4110_v33, %v3387_v30  ;;  %v3452_v48 = vor.u32 %v4126_v37, %v3451_v34  ;;  %v3516_v49 = vor.u32 %v4142_v40, %v3515_v39  ;;  %v4124_v56 = vld [vmem:[#allocation5 + $0x534] sm:$0xf0]  ;;  %v3571_v59 = vld [vmem:[#allocation5 + $0x728] sm:$0xf]  ;;  %v3365_v30 = vld [vmem:[#allocation5 + $0x3f8] sm:$0xf0] }
  0xbc   :  { %1951 = vmatmul.bf16.vlgmr.msra.gmra.mxu3 %v4393_v20  ;;  %1957 = vmatpush.bf16.msrb.mxu0 %v3420_v52  ;;  %v3443_v52 = vld [vmem:[#allocation5 + $0x528] sm:$0xf]  ;;  %v4156_v60 = vld [vmem:[#allocation5 + $0x734] sm:$0xf0]  ;;  %v3165_v37 = vld [vmem:[#allocation5 + $0xd8] sm:$0xf0] }
  0xbd   :  { %v3371_v63 = vld [vmem:[#allocation5 + $0x408] sm:$0xf]  ;;  %v4122_v4 = vld [vmem:[#allocation5 + $0x514] sm:$0xf0]  ;;  %v3572_v7 = vor.u32 %v4156_v60, %v3571_v59  ;;  %v4069_v39 = vld [vmem:[#allocation5 + $0x1cc] sm:$0xf] }
  0xbe   :  { %1970 = vmatpush.bf16.msrb.mxu1 %v3484_v53  ;;  %1983 = vmatpush.bf16.msrb.mxu2 %v3548_v54  ;;  %v3435_v3 = vld [vmem:[#allocation5 + $0x508] sm:$0xf]  ;;  %v4138_v8 = vld [vmem:[#allocation5 + $0x614] sm:$0xf0]  ;;  %v4083_v59 = vld [vmem:[#allocation5 + $0x2ac] sm:$0xf] }
  0xbf   :  { %1996 = vmatpush.bf16.msrb.mxu3 %v3612_v58  ;;  %v4140_v58 = vld [vmem:[#allocation5 + $0x634] sm:$0xf0]  ;;  %v3499_v5 = vld [vmem:[#allocation5 + $0x608] sm:$0xf]  ;;  %v3436_v27 = vor.u32 %v4122_v4, %v3435_v3  ;;  %v3285_v60 = vld [vmem:[#allocation5 + $0x2b8] sm:$0xf0] }
  0xc0   :  { %1958 = vmatpush.bf16.msrb.mxu0 %v3412_v0  ;;  %v4106_v0 = vld [vmem:[#allocation5 + $0x414] sm:$0xf0]  ;;  %v3563_v9 = vld [vmem:[#allocation5 + $0x708] sm:$0xf]  ;;  %v3500_v28 = vor.u32 %v4138_v8, %v3499_v5  ;;  %v3149_v3 = vld [vmem:[#allocation5 + $0x98] sm:$0xf0] }
  0xc1   :  { %v4154_v10 = vld [vmem:[#allocation5 + $0x714] sm:$0xf0]  ;;  %v3372_v16 = vor.u32 %v4106_v0, %v3371_v63  ;;  %v4065_v4 = vld [vmem:[#allocation5 + $0x18c] sm:$0xf]  ;;  %v3277_v8 = vld [vmem:[#allocation5 + $0x298] sm:$0xf0] }
  0xc2   :  { %1971 = vmatpush.bf16.msrb.mxu1 %v3476_v1  ;;  %1984 = vmatpush.bf16.msrb.mxu2 %v3540_v2  ;;  %v895_v47 = vpop.f32.mrf.mxu0  ;;  %v908_v54 = vpop.f32.mrf.mxu1  ;;  %v3444_v1 = vor.u32 %v4124_v56, %v3443_v52  ;;  %v3508_v2 = vor.u32 %v4140_v58, %v3507_v57  ;;  %v3232_v52 = vor.u32 %v4069_v39, %v3229_v43  ;;  %v4067_v56 = vld [vmem:[#allocation5 + $0x1ac] sm:$0xf]  ;;  %v3221_v58 = vld [vmem:[#allocation5 + $0x1b8] sm:$0xf0] }
  0xc3   :  { %1997 = vmatpush.bf16.msrb.mxu3 %v3604_v6  ;;  %v896_v53 = vadd.f32 %v895_v47, %v214_v35  ;;  %v921_v6 = vpop.f32.mrf.mxu2  ;;  %v4101_v47 = vld [vmem:[#allocation5 + $0x3cc] sm:$0xf]  ;;  %v3224_v0 = vor.u32 %v4067_v56, %v3221_v58  ;;  %v3197_v43 = vld [vmem:[#allocation5 + $0x158] sm:$0xf0] }
  0xc4   :  { %1959 = vmatpush.bf16.msrb.mxu0 %v3404_v12  ;;  %v934_v12 = vpop.f32.mrf.mxu3  ;;  %v4061_v39 = vld [vmem:[#allocation5 + $0x14c] sm:$0xf] }
  0xc5   :  { %v909_v61 = vadd.f32 %v908_v54, %v896_v53  ;;  %v4051_v54 = vld [vmem:[#allocation5 + $0xac] sm:$0xf] }
  0xc6   :  { %1972 = vmatpush.bf16.msrb.mxu1 %v3468_v14  ;;  %1985 = vmatpush.bf16.msrb.mxu2 %v3532_v15  ;;  %v3173_v14 = vld [vmem:[#allocation5 + $0xf8] sm:$0xf0]  ;;  %v4071_v15 = vld [vmem:[#allocation5 + $0x1ec] sm:$0xf] }
  0xc7   :  { %1998 = vmatpush.bf16.msrb.mxu3 %v3596_v23  ;;  %v922_v11 = vadd.f32 %v921_v6, %v909_v61  ;;  %v3301_v23 = vld [vmem:[#allocation5 + $0x2f8] sm:$0xf0]  ;;  %v3176_v33 = vor.u32 %v4055_v13, %v3173_v14  ;;  %v3240_v34 = vor.u32 %v4071_v15, %v3237_v17  ;;  %v4099_v61 = vld [vmem:[#allocation5 + $0x3ac] sm:$0xf] }
  0xc8   :  { %1960 = vmatpush.bf16.msrb.mxu0 %v3396_v29  ;;  %v4103_v29 = vld [vmem:[#allocation5 + $0x3ec] sm:$0xf]  ;;  %v3304_v35 = vor.u32 %v4087_v21, %v3301_v23  ;;  %v3213_v6 = vld [vmem:[#allocation5 + $0x198] sm:$0xf0] }
  0xc9   :  { %v4428_v24 = vadd.f32 %v934_v12, %v922_v11  ;;  %v3368_v40 = vor.u32 %v4103_v29, %v3365_v30  ;;  %v3216_v13 = vor.u32 %v4065_v4, %v3213_v6  ;;  %v4047_v15 = vld [vmem:[#allocation5 + $0x6c] sm:$0xf]  ;;  %v3269_v29 = vld [vmem:[#allocation5 + $0x278] sm:$0xf0] }
  0xca   :  { %1973 = vmatpush.bf16.msrb.mxu1 %v3460_v31  ;;  %1986 = vmatpush.bf16.msrb.mxu2 %v3524_v32  ;;  %v897_v25 = vpop.f32.mrf.mxu0  ;;  %v910_v31 = vpop.f32.mrf.mxu1  ;;  %v3564_v32 = vor.u32 %v4154_v10, %v3563_v9  ;;  %v4097_v9 = vld [vmem:[#allocation5 + $0x38c] sm:$0xf]  ;;  %v3341_v10 = vld [vmem:[#allocation5 + $0x398] sm:$0xf0] }
  0xcb   :  { %1999 = vmatpush.bf16.msrb.mxu3 %v3588_v36  ;;  %v4053_v36 = vld [vmem:[#allocation5 + $0xcc] sm:$0xf]  ;;  %v3344_v25 = vor.u32 %v4097_v9, %v3341_v10  ;;  %v3333_v31 = vld [vmem:[#allocation5 + $0x378] sm:$0xf0] }
  0xcc   :  { %1961 = vmatpush.bf16.msrb.mxu0 %v3388_v46  ;;  %v3293_v46 = vld [vmem:[#allocation5 + $0x2d8] sm:$0xf0]  ;;  %v3168_v50 = vor.u32 %v4053_v36, %v3165_v37  ;;  %v936_v51 = vpop.f32.mrf.mxu3  ;;  %v4063_v17 = vld [vmem:[#allocation5 + $0x16c] sm:$0xf] }
  0xcd   :  { %v3296_v53 = vor.u32 %v4085_v45, %v3293_v46  ;;  %v4095_v30 = vld [vmem:[#allocation5 + $0x36c] sm:$0xf]  ;;  %v3133_v37 = vld [vmem:[#allocation5 + $0x58] sm:$0xf0] }
  0xce   :  { %1974 = vmatpush.bf16.msrb.mxu1 %v3452_v48  ;;  %1987 = vmatpush.bf16.msrb.mxu2 %v3516_v49  ;;  %v3357_v48 = vld [vmem:[#allocation5 + $0x3d8] sm:$0xf0]  ;;  %v923_v49 = vpop.f32.mrf.mxu2  ;;  %v4045_v36 = vld [vmem:[#allocation5 + $0x4c] sm:$0xf] }
  0xcf   :  { %2000 = vmatpush.bf16.msrb.mxu3 %v3580_v55  ;;  %v3157_v55 = vld [vmem:[#allocation5 + $0xb8] sm:$0xf0]  ;;  %v3360_v57 = vor.u32 %v4101_v47, %v3357_v48  ;;  %v4077_v45 = vld [vmem:[#allocation5 + $0x24c] sm:$0xf]  ;;  %v3136_v51 = vor.u32 %v4045_v36, %v3133_v37 }
  0xd0   :  { %1962 = vmatpush.bf16.msrb.mxu0 %v3380_v62  ;;  %v3349_v62 = vld [vmem:[#allocation5 + $0x3b8] sm:$0xf0]  ;;  %v3160_v63 = vor.u32 %v4051_v54, %v3157_v55  ;;  %v4093_v49 = vld [vmem:[#allocation5 + $0x34c] sm:$0xf]  ;;  %v3200_v54 = vor.u32 %v4061_v39, %v3197_v43 }
  0xd1   :  { %v3352_v5 = vor.u32 %v4099_v61, %v3349_v62  ;;  %v3261_v46 = vld [vmem:[#allocation5 + $0x258] sm:$0xf0]  ;;  %v4043_v56 = vld [vmem:[#allocation5 + $0x2c] sm:$0xf] }
  0xd2   :  { %1975 = vmatpush.bf16.msrb.mxu1 %v3444_v1  ;;  %1988 = vmatpush.bf16.msrb.mxu2 %v3508_v2  ;;  %v3288_v1 = vor.u32 %v4083_v59, %v3285_v60  ;;  %v4049_v2 = vld [vmem:[#allocation5 + $0x8c] sm:$0xf]  ;;  %v3264_v55 = vor.u32 %v4077_v45, %v3261_v46  ;;  %v3189_v61 = vld [vmem:[#allocation5 + $0x138] sm:$0xf0] }
  0xd3   :  { %2001 = vmatpush.bf16.msrb.mxu3 %v3572_v7  ;;  %v4081_v7 = vld [vmem:[#allocation5 + $0x28c] sm:$0xf]  ;;  %v3152_v11 = vor.u32 %v4049_v2, %v3149_v3  ;;  %v3117_v4 = vld [vmem:[#allocation5 + $0x18] sm:$0xf0] }
  0xd4   :  { %1963 = vmatpush.bf16.msrb.mxu0 %v3372_v16  ;;  %v3280_v14 = vor.u32 %v4081_v7, %v3277_v8  ;;  %v3141_v16 = vld [vmem:[#allocation5 + $0x78] sm:$0xf0]  ;;  %v4059_v58 = vld [vmem:[#allocation5 + $0x12c] sm:$0xf] }
  0xd5   :  { %v4075_v62 = vld [vmem:[#allocation5 + $0x22c] sm:$0xf]  ;;  %v3181_v8 = vld [vmem:[#allocation5 + $0x118] sm:$0xf0] }
  0xd6   :  { %1976 = vmatpush.bf16.msrb.mxu1 %v3436_v27  ;;  %1989 = vmatpush.bf16.msrb.mxu2 %v3500_v28  ;;  %v947_v12 = vpop.f32.mrf.mxu0  ;;  %v3205_v27 = vld [vmem:[#allocation5 + $0x178] sm:$0xf0]  ;;  %v4079_v28 = vld [vmem:[#allocation5 + $0x26c] sm:$0xf] }
  0xd7   :  { %2002 = vmatpush.bf16.msrb.mxu3 %v3564_v32  ;;  %1964 = vmatmul.bf16.vlgmr.msrb.gmra.mxu0 %v4403_v41  ;;  %v948_v21 = vadd.f32 %v947_v12, %v4428_v24  ;;  %v3336_v24 = vor.u32 %v4095_v30, %v3333_v31  ;;  %v4041_v3 = vld [vmem:[#allocation5 + $0xc] sm:$0xf]  ;;  %v3245_v12 = vld [vmem:[#allocation5 + $0x218] sm:$0xf0] }
  0xd8   :  { %2008 = vmatpush.bf16.msra.mxu0 %v3176_v33  ;;  %v960_v23 = vpop.f32.mrf.mxu1  ;;  %v3144_v33 = vor.u32 %v4047_v15, %v3141_v16  ;;  %v4057_v7 = vld [vmem:[#allocation5 + $0x10c] sm:$0xf]  ;;  %v3421_v39 = vld [vmem:[#allocation5 + $0x4d8] sm:$0xf0] }
  0xd9   :  { %1990 = vmatmul.bf16.vlgmr.msrb.gmra.mxu2 %v4401_v38  ;;  %1977 = vmatmul.bf16.vlgmr.msrb.gmra.mxu1 %v4407_v44  ;;  %v961_v32 = vadd.f32 %v960_v23, %v948_v21  ;;  %v4073_v9 = vld [vmem:[#allocation5 + $0x20c] sm:$0xf]  ;;  %v3120_v23 = vor.u32 %v4041_v3, %v3117_v4  ;;  %v3485_v43 = vld [vmem:[#allocation5 + $0x5d8] sm:$0xf0]  ;;  %v215_v3 = vperm.slane %v4425_v26, 1 }
  0xda   :  { %2021 = vmatpush.bf16.msra.mxu1 %v3240_v34  ;;  %2034 = vmatpush.bf16.msra.mxu2 %v3304_v35  ;;  %v3208_v34 = vor.u32 %v4063_v17, %v3205_v27  ;;  %v3272_v35 = vor.u32 %v4079_v28, %v3269_v29  ;;  %v4119_v16 = vld [vmem:[#allocation5 + $0x4ec] sm:$0xf]  ;;  %v3429_v17 = vld [vmem:[#allocation5 + $0x4f8] sm:$0xf0]  ;;  %v3184_v29 = vor.u32 %v4057_v7, %v3181_v8 }
  0xdb   :  { %2047 = vmatpush.bf16.msra.mxu3 %v3368_v40  ;;  %v4135_v21 = vld [vmem:[#allocation5 + $0x5ec] sm:$0xf]  ;;  %v3557_v28 = vld [vmem:[#allocation5 + $0x6f8] sm:$0xf0]  ;;  %v3248_v30 = vor.u32 %v4073_v9, %v3245_v12 }
  0xdc   :  { %2003 = vmatmul.bf16.vlgmr.msrb.gmra.mxu3 %v4405_v42  ;;  %2009 = vmatpush.bf16.msra.mxu0 %v3168_v50  ;;  %v973_v40 = vpop.f32.mrf.mxu2  ;;  %v3325_v50 = vld [vmem:[#allocation5 + $0x358] sm:$0xf0]  ;;  %v4151_v27 = vld [vmem:[#allocation5 + $0x6ec] sm:$0xf] }
  0xdd   :  { %v974_v47 = vadd.f32 %v973_v40, %v961_v32  ;;  %v3328_v60 = vor.u32 %v4093_v49, %v3325_v50  ;;  %v4167_v31 = vld [vmem:[#allocation5 + $0x7ec] sm:$0xf]  ;;  %v3621_v32 = vld [vmem:[#allocation5 + $0x7f8] sm:$0xf0]  ;;  %v3560_v36 = vor.u32 %v4151_v27, %v3557_v28 }
  0xde   :  { %2022 = vmatpush.bf16.msra.mxu1 %v3232_v52  ;;  %2035 = vmatpush.bf16.msra.mxu2 %v3296_v53  ;;  %v949_v53 = vpop.f32.mrf.mxu0  ;;  %v4117_v37 = vld [vmem:[#allocation5 + $0x4cc] sm:$0xf]  ;;  %v3549_v46 = vld [vmem:[#allocation5 + $0x6d8] sm:$0xf0] }
  0xdf   :  { %2048 = vmatpush.bf16.msra.mxu3 %v3360_v57  ;;  %v986_v48 = vpop.f32.mrf.mxu3  ;;  %v3125_v57 = vld [vmem:[#allocation5 + $0x38] sm:$0xf0]  ;;  %v4133_v40 = vld [vmem:[#allocation5 + $0x5cc] sm:$0xf]  ;;  %v3424_v49 = vor.u32 %v4117_v37, %v3421_v39 }
  0xe0   :  { %2010 = vmatpush.bf16.msra.mxu0 %v3160_v63  ;;  %v4435_v52 = vadd.f32 %v986_v48, %v974_v47  ;;  %v962_v59 = vpop.f32.mrf.mxu1  ;;  %v3253_v63 = vld [vmem:[#allocation5 + $0x238] sm:$0xf0]  ;;  %v3128_v2 = vor.u32 %v4043_v56, %v3125_v57  ;;  %v4149_v45 = vld [vmem:[#allocation5 + $0x6cc] sm:$0xf]  ;;  %v3488_v50 = vor.u32 %v4133_v40, %v3485_v43 }
  0xe1   :  { %v3256_v6 = vor.u32 %v4075_v62, %v3253_v63  ;;  %v4165_v47 = vld [vmem:[#allocation5 + $0x7cc] sm:$0xf]  ;;  %v3613_v48 = vld [vmem:[#allocation5 + $0x7d8] sm:$0xf0] }
  0xe2   :  { %2023 = vmatpush.bf16.msra.mxu1 %v3224_v0  ;;  %2036 = vmatpush.bf16.msra.mxu2 %v3288_v1  ;;  %v4091_v0 = vld [vmem:[#allocation5 + $0x32c] sm:$0xf]  ;;  %v3317_v1 = vld [vmem:[#allocation5 + $0x338] sm:$0xf0]  ;;  %v3616_v56 = vor.u32 %v4165_v47, %v3613_v48 }
  0xe3   :  { %2049 = vmatpush.bf16.msra.mxu3 %v3352_v5  ;;  %v3192_v5 = vor.u32 %v4059_v58, %v3189_v61  ;;  %v4115_v53 = vld [vmem:[#allocation5 + $0x4ac] sm:$0xf]  ;;  %v3477_v57 = vld [vmem:[#allocation5 + $0x5b8] sm:$0xf0] }
  0xe4   :  { %2011 = vmatpush.bf16.msra.mxu0 %v3152_v11  ;;  %v975_v10 = vpop.f32.mrf.mxu2  ;;  %v3320_v11 = vor.u32 %v4091_v0, %v3317_v1  ;;  %v4147_v58 = vld [vmem:[#allocation5 + $0x6ac] sm:$0xf]  ;;  %v3541_v59 = vld [vmem:[#allocation5 + $0x6b8] sm:$0xf0] }
  0xe5   :  { %v3605_v61 = vld [vmem:[#allocation5 + $0x7b8] sm:$0xf0]  ;;  %v4113_v63 = vld [vmem:[#allocation5 + $0x48c] sm:$0xf]  ;;  %v3544_v1 = vor.u32 %v4147_v58, %v3541_v59 }
  0xe6   :  { %2024 = vmatpush.bf16.msra.mxu1 %v3216_v13  ;;  %2037 = vmatpush.bf16.msra.mxu2 %v3280_v14  ;;  %v4089_v13 = vld [vmem:[#allocation5 + $0x30c] sm:$0xf]  ;;  %v3309_v14 = vld [vmem:[#allocation5 + $0x318] sm:$0xf0] }
  0xe7   :  { %2050 = vmatpush.bf16.msra.mxu3 %v3344_v25  ;;  %v988_v15 = vpop.f32.mrf.mxu3  ;;  %v3493_v25 = vld [vmem:[#allocation5 + $0x5f8] sm:$0xf0]  ;;  %v4161_v7 = vld [vmem:[#allocation5 + $0x78c] sm:$0xf] }
  0xe8   :  { %2012 = vmatpush.bf16.msra.mxu0 %v3144_v33  ;;  %v3312_v33 = vor.u32 %v4089_v13, %v3309_v14  ;;  %v3397_v12 = vld [vmem:[#allocation5 + $0x478] sm:$0xf0]  ;;  %v4127_v13 = vld [vmem:[#allocation5 + $0x56c] sm:$0xf] }
  0xe9   :  { %v4141_v37 = vld [vmem:[#allocation5 + $0x64c] sm:$0xf]  ;;  %v3517_v39 = vld [vmem:[#allocation5 + $0x658] sm:$0xf0] }
  0xea   :  { %2025 = vmatpush.bf16.msra.mxu1 %v3208_v34  ;;  %2038 = vmatpush.bf16.msra.mxu2 %v3272_v35  ;;  %v3432_v34 = vor.u32 %v4119_v16, %v3429_v17  ;;  %v3496_v35 = vor.u32 %v4135_v21, %v3493_v25  ;;  %v3461_v16 = vld [vmem:[#allocation5 + $0x578] sm:$0xf0]  ;;  %v4143_v17 = vld [vmem:[#allocation5 + $0x66c] sm:$0xf] }
  0xeb   :  { %2051 = vmatpush.bf16.msra.mxu3 %v3336_v24  ;;  %v3624_v24 = vor.u32 %v4167_v31, %v3621_v32  ;;  %v3525_v21 = vld [vmem:[#allocation5 + $0x678] sm:$0xf0]  ;;  %v4109_v31 = vld [vmem:[#allocation5 + $0x44c] sm:$0xf] }
  0xec   :  { %2013 = vmatpush.bf16.msra.mxu0 %v3136_v51  ;;  %v3552_v51 = vor.u32 %v4149_v45, %v3549_v46  ;;  %v3589_v25 = vld [vmem:[#allocation5 + $0x778] sm:$0xf0]  ;;  %v4157_v43 = vld [vmem:[#allocation5 + $0x74c] sm:$0xf] }
  0xed   :  { %v3389_v32 = vld [vmem:[#allocation5 + $0x458] sm:$0xf0]  ;;  %v4139_v58 = vld [vmem:[#allocation5 + $0x62c] sm:$0xf] }
  0xee   :  { %2026 = vmatpush.bf16.msra.mxu1 %v3200_v54  ;;  %2039 = vmatpush.bf16.msra.mxu2 %v3264_v55  ;;  %v3413_v54 = vld [vmem:[#allocation5 + $0x4b8] sm:$0xf0]  ;;  %v4131_v55 = vld [vmem:[#allocation5 + $0x5ac] sm:$0xf]  ;;  %v3392_v46 = vor.u32 %v4109_v31, %v3389_v32  ;;  %v4179_v31 = vld [vmem:[#allocation8 + $0x154] sm:$0xf] }
  0xef   :  { %2052 = vmatpush.bf16.msra.mxu3 %v3328_v60  ;;  %v4163_v60 = vld [vmem:[#allocation5 + $0x7ac] sm:$0xf]  ;;  %v3416_v62 = vor.u32 %v4115_v53, %v3413_v54  ;;  %v3480_v0 = vor.u32 %v4131_v55, %v3477_v57  ;;  %v3581_v45 = vld [vmem:[#allocation5 + $0x758] sm:$0xf0]  ;;  %v3669_v32 = vld [vmem:[#allocation8 + $0x158] sm:$0xf0] }
  0xf0   :  { %2014 = vmatpush.bf16.msra.mxu0 %v3128_v2  ;;  %v3405_v2 = vld [vmem:[#allocation5 + $0x498] sm:$0xf0]  ;;  %v3608_v4 = vor.u32 %v4163_v60, %v3605_v61  ;;  %v4123_v54 = vld [vmem:[#allocation5 + $0x52c] sm:$0xf] }
  0xf1   :  { %v3408_v8 = vor.u32 %v4113_v63, %v3405_v2  ;;  %v3381_v53 = vld [vmem:[#allocation5 + $0x438] sm:$0xf0]  ;;  %v4155_v60 = vld [vmem:[#allocation5 + $0x72c] sm:$0xf] }
  0xf2   :  { %2027 = vmatpush.bf16.msra.mxu1 %v3192_v5  ;;  %2040 = vmatpush.bf16.msra.mxu2 %v3256_v6  ;;  %v3469_v5 = vld [vmem:[#allocation5 + $0x598] sm:$0xf0]  ;;  %v4145_v6 = vld [vmem:[#allocation5 + $0x68c] sm:$0xf] }
  0xf3   :  { %2053 = vmatpush.bf16.msra.mxu3 %v3320_v11  ;;  %v4111_v11 = vld [vmem:[#allocation5 + $0x46c] sm:$0xf]  ;;  %v3445_v57 = vld [vmem:[#allocation5 + $0x538] sm:$0xf0] }
  0xf4   :  { %2015 = vmatpush.bf16.msra.mxu0 %v3120_v23  ;;  %v999_v9 = vpop.f32.mrf.mxu0  ;;  %v4159_v23 = vld [vmem:[#allocation5 + $0x76c] sm:$0xf]  ;;  %v3400_v28 = vor.u32 %v4111_v11, %v3397_v12  ;;  %v3509_v59 = vld [vmem:[#allocation5 + $0x638] sm:$0xf0]  ;;  %v4183_v11 = vld [vmem:[#allocation8 + $0x174] sm:$0xf] }
  0xf5   :  { %v1000_v14 = vadd.f32 %v999_v9, %v215_v3  ;;  %v3573_v61 = vld [vmem:[#allocation5 + $0x738] sm:$0xf0]  ;;  %v4105_v63 = vld [vmem:[#allocation5 + $0x40c] sm:$0xf]  ;;  %v3683_v9 = vld [vmem:[#allocation8 + $0x170] sm:$0xf] }
  0xf6   :  { %2028 = vmatpush.bf16.msra.mxu1 %v3184_v29  ;;  %2041 = vmatpush.bf16.msra.mxu2 %v3248_v30  ;;  %v1012_v15 = vpop.f32.mrf.mxu1  ;;  %v3464_v29 = vor.u32 %v4127_v13, %v3461_v16  ;;  %v3528_v30 = vor.u32 %v4143_v17, %v3525_v21  ;;  %v3373_v2 = vld [vmem:[#allocation5 + $0x418] sm:$0xf0]  ;;  %v3685_v12 = vld [vmem:[#allocation8 + $0x178] sm:$0xf0]  ;;  %v3675_v17 = vld [vmem:[#allocation8 + $0x160] sm:$0xf] }
  0xf7   :  { %2054 = vmatpush.bf16.msra.mxu3 %v3312_v33  ;;  %2016 = vmatmul.bf16.vlgmr.msra.gmra.mxu0 %v4391_v19  ;;  %v3533_v19 = vld [vmem:[#allocation5 + $0x698] sm:$0xf0]  ;;  %v1013_v27 = vadd.f32 %v1012_v15, %v1000_v14  ;;  %v4125_v33 = vld [vmem:[#allocation5 + $0x54c] sm:$0xf]  ;;  %v3688_v16 = vor.u32 %v4183_v11, %v3685_v12 }
  0xf8   :  { %2060 = vmatpush.bf16.msrb.mxu0 %v3432_v34  ;;  %v3536_v10 = vor.u32 %v4145_v6, %v3533_v19  ;;  %v3437_v3 = vld [vmem:[#allocation5 + $0x518] sm:$0xf0]  ;;  %v4137_v6 = vld [vmem:[#allocation5 + $0x60c] sm:$0xf] }
  0xf9   :  { %2042 = vmatmul.bf16.vlgmr.msra.gmra.mxu2 %v4389_v18  ;;  %2029 = vmatmul.bf16.vlgmr.msra.gmra.mxu1 %v4395_v22  ;;  %v4129_v18 = vld [vmem:[#allocation5 + $0x58c] sm:$0xf]  ;;  %v3501_v19 = vld [vmem:[#allocation5 + $0x618] sm:$0xf0] }
  0xfa   :  { %2073 = vmatpush.bf16.msrb.mxu1 %v3496_v35  ;;  %2086 = vmatpush.bf16.msrb.mxu2 %v3560_v36  ;;  %v3472_v22 = vor.u32 %v4129_v18, %v3469_v5  ;;  %v3592_v35 = vor.u32 %v4159_v23, %v3589_v25  ;;  %v3453_v36 = vld [vmem:[#allocation5 + $0x558] sm:$0xf0]  ;;  %v4121_v18 = vld [vmem:[#allocation5 + $0x50c] sm:$0xf]  ;;  %v3576_v5 = vor.u32 %v4155_v60, %v3573_v61  ;;  %v4181_v23 = vld [vmem:[#allocation8 + $0x164] sm:$0xf] }
  0xfb   :  { %2099 = vmatpush.bf16.msrb.mxu3 %v3624_v24  ;;  %v3440_v13 = vor.u32 %v4121_v18, %v3437_v3  ;;  %v3504_v14 = vor.u32 %v4137_v6, %v3501_v19  ;;  %v4182_v21 = vld [vmem:[#allocation8 + $0x164] sm:$0xf0]  ;;  %v3677_v25 = vld [vmem:[#allocation8 + $0x168] sm:$0xf0]  ;;  %v4169_v19 = vld [vmem:[#allocation8 + $0x104] sm:$0xf] }
  0xfc   :  { %2055 = vmatmul.bf16.vlgmr.msra.gmra.mxu3 %v4393_v20  ;;  %2061 = vmatpush.bf16.msrb.mxu0 %v3424_v49  ;;  %v3597_v20 = vld [vmem:[#allocation5 + $0x798] sm:$0xf0]  ;;  %v1025_v34 = vpop.f32.mrf.mxu2  ;;  %v1001_v48 = vpop.f32.mrf.mxu0  ;;  %v3456_v49 = vor.u32 %v4125_v33, %v3453_v36  ;;  %v4178_v36 = vld [vmem:[#allocation8 + $0x144] sm:$0xf0] }
  0xfd   :  { %v3600_v26 = vor.u32 %v4161_v7, %v3597_v20  ;;  %v1026_v40 = vadd.f32 %v1025_v34, %v1013_v27  ;;  %v4153_v7 = vld [vmem:[#allocation5 + $0x70c] sm:$0xf]  ;;  %v3676_v27 = vor.u32 %v4182_v21, %v3675_v17  ;;  %v3672_v34 = vor.u32 %v4179_v31, %v3669_v32  ;;  %v4021_v21 = vld [vmem:[#allocation8 + $0x64] sm:$0xf]  ;;  %v4019_v31 = vld [vmem:[#allocation8 + $0x54] sm:$0xf] }
  0xfe   :  { %2074 = vmatpush.bf16.msrb.mxu1 %v3488_v50  ;;  %2087 = vmatpush.bf16.msrb.mxu2 %v3552_v51  ;;  %v3520_v50 = vor.u32 %v4141_v37, %v3517_v39  ;;  %v4107_v51 = vld [vmem:[#allocation5 + $0x42c] sm:$0xf]  ;;  %v1014_v55 = vpop.f32.mrf.mxu1  ;;  %v4177_v37 = vld [vmem:[#allocation8 + $0x144] sm:$0xf] }
  0xff   :  { %2100 = vmatpush.bf16.msrb.mxu3 %v3616_v56  ;;  %v1038_v24 = vpop.f32.mrf.mxu3  ;;  %v3584_v56 = vor.u32 %v4157_v43, %v3581_v45  ;;  %v3651_v43 = vld [vmem:[#allocation8 + $0x130] sm:$0xf]  ;;  %v4176_v45 = vld [vmem:[#allocation8 + $0x134] sm:$0xf0]  ;;  %v4170_v6 = vld [vmem:[#allocation8 + $0x104] sm:$0xf0] }
 0x100   :  { %2062 = vmatpush.bf16.msrb.mxu0 %v3416_v62  ;;  %v4442_v47 = vadd.f32 %v1038_v24, %v1026_v40  ;;  %v3384_v62 = vor.u32 %v4107_v51, %v3381_v53  ;;  %v3643_v53 = vld [vmem:[#allocation8 + $0x120] sm:$0xf]  ;;  %v4022_v17 = vld [vmem:[#allocation8 + $0x64] sm:$0xf0] }
 0x102   :  { %2075 = vmatpush.bf16.msrb.mxu1 %v3480_v0  ;;  %2088 = vmatpush.bf16.msrb.mxu2 %v3544_v1  ;;  %v3448_v0 = vor.u32 %v4123_v54, %v3445_v57  ;;  %v3512_v1 = vor.u32 %v4139_v58, %v3509_v59  ;;  %v4174_v54 = vld [vmem:[#allocation8 + $0x124] sm:$0xf0]  ;;  %v4173_v57 = vld [vmem:[#allocation8 + $0x124] sm:$0xf]  ;;  %v3645_v58 = vld [vmem:[#allocation8 + $0x128] sm:$0xf0] }
 0x103   :  { %2101 = vmatpush.bf16.msrb.mxu3 %v3608_v4  ;;  %v3644_v60 = vor.u32 %v4174_v54, %v3643_v53  ;;  %v3771_v53 = vld [vmem:[#allocation8 + $0x20] sm:$0xf]  ;;  %v4014_v54 = vld [vmem:[#allocation8 + $0x24] sm:$0xf0] }
 0x104   :  { %2063 = vmatpush.bf16.msrb.mxu0 %v3408_v8  ;;  %v1027_v4 = vpop.f32.mrf.mxu2  ;;  %v3565_v8 = vld [vmem:[#allocation5 + $0x718] sm:$0xf0] }
 0x105   :  { %v3568_v15 = vor.u32 %v4153_v7, %v3565_v8  ;;  %v3811_v8 = vld [vmem:[#allocation8 + $0x70] sm:$0xf] }
 0x106   :  { %2076 = vmatpush.bf16.msrb.mxu1 %v3472_v22  ;;  %2089 = vmatpush.bf16.msrb.mxu2 %v3536_v10  ;;  %v4184_v22 = vld [vmem:[#allocation8 + $0x174] sm:$0xf0]  ;;  %v3376_v10 = vor.u32 %v4105_v63, %v3373_v2  ;;  %v3635_v63 = vld [vmem:[#allocation8 + $0x110] sm:$0xf]  ;;  %v3637_v2 = vld [vmem:[#allocation8 + $0x118] sm:$0xf0] }
 0x107   :  { %2102 = vmatpush.bf16.msrb.mxu3 %v3600_v26  ;;  %v1040_v20 = vpop.f32.mrf.mxu3  ;;  %v3684_v26 = vor.u32 %v4184_v22, %v3683_v9  ;;  %v4024_v9 = vld [vmem:[#allocation8 + $0x74] sm:$0xf0]  ;;  %v4023_v22 = vld [vmem:[#allocation8 + $0x74] sm:$0xf] }
 0x108   :  { %2064 = vmatpush.bf16.msrb.mxu0 %v3400_v28  ;;  %v3680_v28 = vor.u32 %v4181_v23, %v3677_v25  ;;  %v3629_v20 = vld [vmem:[#allocation8 + $0x108] sm:$0xf0] }
 0x109   :  { %v3632_v12 = vor.u32 %v4169_v19, %v3629_v20  ;;  %v3805_v25 = vld [vmem:[#allocation8 + $0x68] sm:$0xf0] }
 0x10a   :  { %2077 = vmatpush.bf16.msrb.mxu1 %v3464_v29  ;;  %2090 = vmatpush.bf16.msrb.mxu2 %v3528_v30  ;;  %v3667_v29 = vld [vmem:[#allocation8 + $0x150] sm:$0xf]  ;;  %v4180_v30 = vld [vmem:[#allocation8 + $0x154] sm:$0xf0] }
 0x10b   :  { %2103 = vmatpush.bf16.msrb.mxu3 %v3592_v35  ;;  %v3668_v33 = vor.u32 %v4180_v30, %v3667_v29  ;;  %v3659_v35 = vld [vmem:[#allocation8 + $0x140] sm:$0xf]  ;;  %v3795_v29 = vld [vmem:[#allocation8 + $0x50] sm:$0xf]  ;;  %v4020_v30 = vld [vmem:[#allocation8 + $0x54] sm:$0xf0] }
 0x10c   :  { %2065 = vmatpush.bf16.msrb.mxu0 %v3392_v46  ;;  %v3660_v40 = vor.u32 %v4178_v36, %v3659_v35  ;;  %v4175_v46 = vld [vmem:[#allocation8 + $0x134] sm:$0xf]  ;;  %v4451_v36 = vld [vmem:[#allocation7 + $0x2] sm:$0x3] }
 0x10e   :  { %2078 = vmatpush.bf16.msrb.mxu1 %v3456_v49  ;;  %2091 = vmatpush.bf16.msrb.mxu2 %v3520_v50  ;;  %v3652_v49 = vor.u32 %v4176_v45, %v3651_v43  ;;  %v1260_v43 = vperm.slane %v4451_v36, 0 }
 0x10f   :  { %2104 = vmatpush.bf16.msrb.mxu3 %v3584_v56 }
 0x110   :  { %2066 = vmatpush.bf16.msrb.mxu0 %v3384_v62  ;;  %v3648_v62 = vor.u32 %v4173_v57, %v3645_v58  ;;  %v4013_v57 = vld [vmem:[#allocation8 + $0x24] sm:$0xf]  ;;  %v3773_v58 = vld [vmem:[#allocation8 + $0x28] sm:$0xf0] }
 0x112   :  { %2079 = vmatpush.bf16.msrb.mxu1 %v3448_v0  ;;  %2092 = vmatpush.bf16.msrb.mxu2 %v3512_v1  ;;  %v4172_v0 = vld [vmem:[#allocation8 + $0x114] sm:$0xf0]  ;;  %v4171_v1 = vld [vmem:[#allocation8 + $0x114] sm:$0xf] }
 0x113   :  { %2105 = vmatpush.bf16.msrb.mxu3 %v3576_v5  ;;  %v3636_v18 = vor.u32 %v4172_v0, %v3635_v63  ;;  %v3640_v4 = vor.u32 %v4171_v1, %v3637_v2  ;;  %v3627_v5 = vld [vmem:[#allocation8 + $0x100] sm:$0xf]  ;;  %v3776_v63 = vor.u32 %v4013_v57, %v3773_v58  ;;  %v4011_v0 = vld [vmem:[#allocation8 + $0x14] sm:$0xf]  ;;  %v3747_v1 = vld [vmem:[#allocation8 + $0x1f0] sm:$0xf] }
 0x114   :  { %2067 = vmatpush.bf16.msrb.mxu0 %v3376_v10  ;;  %v1051_v39 = vpop.f32.mrf.mxu0  ;;  %v3813_v10 = vld [vmem:[#allocation8 + $0x78] sm:$0xf0]  ;;  %v3628_v11 = vor.u32 %v4170_v6, %v3627_v5  ;;  %v4200_v2 = vld [vmem:[#allocation8 + $0x1f4] sm:$0xf0]  ;;  %v3707_v57 = vld [vmem:[#allocation8 + $0x1a0] sm:$0xf] }
 0x115   :  { %v1052_v24 = vadd.f32 %v1051_v39, %v4442_v47  ;;  %v3787_v39 = vld [vmem:[#allocation8 + $0x40] sm:$0xf]  ;;  %v3749_v5 = vld [vmem:[#allocation8 + $0x1f8] sm:$0xf0]  ;;  %v4190_v58 = vld [vmem:[#allocation8 + $0x1a4] sm:$0xf0] }
 0x116   :  { %2080 = vmatpush.bf16.msrb.mxu1 %v3440_v13  ;;  %2093 = vmatpush.bf16.msrb.mxu2 %v3504_v14  ;;  %v3812_v13 = vor.u32 %v4024_v9, %v3811_v8  ;;  %v3816_v14 = vor.u32 %v4023_v22, %v3813_v10  ;;  %v3755_v8 = vld [vmem:[#allocation8] sm:$0xf]  ;;  %v4010_v9 = vld [vmem:[#allocation8 + $0x4] sm:$0xf0]  ;;  %v4009_v22 = vld [vmem:[#allocation8 + $0x4] sm:$0xf] }
 0x117   :  { %2106 = vmatpush.bf16.msrb.mxu3 %v3568_v15  ;;  %2068 = vmatmul.bf16.vlgmr.msrb.gmra.mxu0 %v4403_v41  ;;  %v3661_v41 = vld [vmem:[#allocation8 + $0x148] sm:$0xf0] }
 0x118   :  { %2308 = vmatpush.bf16.msra.mxu0 %v3684_v26  ;;  %v3757_v10 = vld [vmem:[#allocation8 + $0x8] sm:$0xf0] }
 0x119   :  { %2081 = vmatmul.bf16.vlgmr.msrb.gmra.mxu1 %v4407_v44  ;;  %2094 = vmatmul.bf16.vlgmr.msrb.gmra.mxu2 %v4401_v38  ;;  %v1064_v44 = vpop.f32.mrf.mxu1  ;;  %v3664_v38 = vor.u32 %v4177_v37, %v3661_v41 }
 0x11a   :  { %2334 = vmatpush.bf16.msra.mxu2 %v3688_v16  ;;  %2107 = vmatmul.bf16.vlgmr.msrb.gmra.mxu3 %v4405_v42  ;;  %v3653_v42 = vld [vmem:[#allocation8 + $0x138] sm:$0xf0]  ;;  %v1065_v48 = vadd.f32 %v1064_v44, %v1052_v24  ;;  %v3803_v16 = vld [vmem:[#allocation8 + $0x60] sm:$0xf]  ;;  %v4017_v24 = vld [vmem:[#allocation8 + $0x44] sm:$0xf] }
 0x11b   :  { %v3656_v51 = vor.u32 %v4175_v46, %v3653_v42  ;;  %v3804_v23 = vor.u32 %v4022_v17, %v3803_v16  ;;  %v3779_v46 = vld [vmem:[#allocation8 + $0x30] sm:$0xf]  ;;  %v4016_v42 = vld [vmem:[#allocation8 + $0x34] sm:$0xf0]  ;;  %v4197_v16 = vld [vmem:[#allocation8 + $0x1e4] sm:$0xf] }
 0x11c   :  { %2309 = vmatpush.bf16.msra.mxu0 %v3676_v27  ;;  %v1077_v50 = vpop.f32.mrf.mxu2  ;;  %v1053_v59 = vpop.f32.mrf.mxu0  ;;  %v3808_v27 = vor.u32 %v4021_v21, %v3805_v25  ;;  %v3741_v21 = vld [vmem:[#allocation8 + $0x1e8] sm:$0xf0] }
 0x11d   :  { %v1078_v55 = vadd.f32 %v1077_v50, %v1065_v48  ;;  %v4015_v48 = vld [vmem:[#allocation8 + $0x34] sm:$0xf]  ;;  %v3780_v50 = vor.u32 %v4016_v42, %v3779_v46  ;;  %v3715_v46 = vld [vmem:[#allocation8 + $0x1b0] sm:$0xf]  ;;  %v4192_v42 = vld [vmem:[#allocation8 + $0x1b4] sm:$0xf0] }
 0x11e   :  { %2335 = vmatpush.bf16.msra.mxu2 %v3680_v28 }
 0x11f   :  { %v1090_v56 = vpop.f32.mrf.mxu3 }
 0x120   :  { %2310 = vmatpush.bf16.msra.mxu0 %v3668_v33  ;;  %v4449_v47 = vadd.f32 %v1090_v56, %v1078_v55  ;;  %v3796_v33 = vor.u32 %v4020_v30, %v3795_v29  ;;  %v4196_v29 = vld [vmem:[#allocation8 + $0x1d4] sm:$0xf0]  ;;  %v4195_v30 = vld [vmem:[#allocation8 + $0x1d4] sm:$0xf] }
 0x121   :  { %v1066_v61 = vpop.f32.mrf.mxu1 }
 0x122   :  { %2336 = vmatpush.bf16.msra.mxu2 %v3672_v34  ;;  %v3797_v34 = vld [vmem:[#allocation8 + $0x58] sm:$0xf0]  ;;  %v3763_v61 = vld [vmem:[#allocation8 + $0x10] sm:$0xf] }
 0x123   :  { %v3800_v35 = vor.u32 %v4019_v31, %v3797_v34  ;;  %v3733_v31 = vld [vmem:[#allocation8 + $0x1d8] sm:$0xf0] }
 0x124   :  { %2311 = vmatpush.bf16.msra.mxu0 %v3660_v40  ;;  %v1079_v3 = vpop.f32.mrf.mxu2  ;;  %v4018_v40 = vld [vmem:[#allocation8 + $0x44] sm:$0xf0] }
 0x125   :  { %v3788_v44 = vor.u32 %v4018_v40, %v3787_v39  ;;  %v3748_v3 = vor.u32 %v4200_v2, %v3747_v1  ;;  %v4193_v39 = vld [vmem:[#allocation8 + $0x1c4] sm:$0xf]  ;;  %v3699_v1 = vld [vmem:[#allocation8 + $0x190] sm:$0xf]  ;;  %v4188_v2 = vld [vmem:[#allocation8 + $0x194] sm:$0xf0] }
 0x126   :  { %2337 = vmatpush.bf16.msra.mxu2 %v3664_v38  ;;  %v3789_v38 = vld [vmem:[#allocation8 + $0x48] sm:$0xf0] }
 0x127   :  { %v1092_v7 = vpop.f32.mrf.mxu3  ;;  %v3792_v45 = vor.u32 %v4017_v24, %v3789_v38  ;;  %2321 = vmatpush.bf16.msra.mxu1 %v3748_v3  ;;  %v4187_v3 = vld [vmem:[#allocation8 + $0x194] sm:$0xf] }
 0x128   :  { %2312 = vmatpush.bf16.msra.mxu0 %v3652_v49 }
 0x12a   :  { %2338 = vmatpush.bf16.msra.mxu2 %v3656_v51  ;;  %v3781_v51 = vld [vmem:[#allocation8 + $0x38] sm:$0xf0] }
 0x12b   :  { %v3784_v56 = vor.u32 %v4015_v48, %v3781_v51  ;;  %v3717_v51 = vld [vmem:[#allocation8 + $0x1b8] sm:$0xf0] }
 0x12c   :  { %2313 = vmatpush.bf16.msra.mxu0 %v3644_v60  ;;  %v3772_v60 = vor.u32 %v4014_v54, %v3771_v53  ;;  %v3716_v54 = vor.u32 %v4192_v42, %v3715_v46  ;;  %v1261_v42 = vperm.slane %v4451_v36, 1  ;;  %v4028_v36 = vld [vmem:[#allocation8 + $0x94] sm:$0xf0] }
 0x12e   :  { %2339 = vmatpush.bf16.msra.mxu2 %v3648_v62  ;;  %v4012_v62 = vld [vmem:[#allocation8 + $0x14] sm:$0xf0] }
 0x12f   :  { %v3764_v7 = vor.u32 %v4012_v62, %v3763_v61  ;;  %v3709_v61 = vld [vmem:[#allocation8 + $0x1a8] sm:$0xf0] }
 0x130   :  { %2314 = vmatpush.bf16.msra.mxu0 %v3636_v18  ;;  %v3765_v18 = vld [vmem:[#allocation8 + $0x18] sm:$0xf0] }
 0x131   :  { %v3768_v20 = vor.u32 %v4011_v0, %v3765_v18 }
 0x132   :  { %2340 = vmatpush.bf16.msra.mxu2 %v3640_v4  ;;  %v4199_v4 = vld [vmem:[#allocation8 + $0x1f4] sm:$0xf] }
 0x133   :  { %v3752_v19 = vor.u32 %v4199_v4, %v3749_v5  ;;  %v3701_v4 = vld [vmem:[#allocation8 + $0x198] sm:$0xf0]  ;;  %v3700_v5 = vor.u32 %v4188_v2, %v3699_v1  ;;  %v4027_v1 = vld [vmem:[#allocation8 + $0x94] sm:$0xf] }
 0x134   :  { %2315 = vmatpush.bf16.msra.mxu0 %v3628_v11  ;;  %v1913_v15 = vpop.f32.mrf.mxu0  ;;  %v3829_v2 = vld [vmem:[#allocation8 + $0x98] sm:$0xf0] }
 0x135   :  { %v1914_v59 = vadd.f32 %v1913_v15, %v1260_v43  ;;  %2347 = vmatpush.bf16.msra.mxu3 %v3752_v19  ;;  %v3739_v15 = vld [vmem:[#allocation8 + $0x1e0] sm:$0xf]  ;;  %v4186_v19 = vld [vmem:[#allocation8 + $0x184] sm:$0xf0] }
 0x136   :  { %2341 = vmatpush.bf16.msra.mxu2 %v3632_v12  ;;  %v1926_v26 = vpop.f32.mrf.mxu1  ;;  %v3756_v12 = vor.u32 %v4010_v9, %v3755_v8  ;;  %v3693_v8 = vld [vmem:[#allocation8 + $0x188] sm:$0xf0] }
 0x137   :  { %v1927_v6 = vadd.f32 %v1926_v26, %v1914_v59  ;;  %v4198_v26 = vld [vmem:[#allocation8 + $0x1e4] sm:$0xf0] }
 0x138   :  { %2520 = vmatpush.bf16.msrb.mxu0 %v3812_v13  ;;  %v3760_v13 = vor.u32 %v4009_v22, %v3757_v10  ;;  %v3740_v17 = vor.u32 %v4198_v26, %v3739_v15  ;;  %v1094_v10 = vmax.f32 %v4435_v52, 0.0  ;;  %v3877_v15 = vld [vmem:[#allocation8 + $0xf8] sm:$0xf0] }
 0x13a   :  { %2546 = vmatpush.bf16.msrb.mxu2 %v3816_v14  ;;  %2322 = vmatpush.bf16.msra.mxu1 %v3740_v17  ;;  %v3867_v17 = vld [vmem:[#allocation8 + $0xe0] sm:$0xf] }
 0x13c   :  { %2521 = vmatpush.bf16.msrb.mxu0 %v3804_v23  ;;  %v1939_v28 = vpop.f32.mrf.mxu2  ;;  %v1915_v37 = vpop.f32.mrf.mxu0  ;;  %v3731_v23 = vld [vmem:[#allocation8 + $0x1d0] sm:$0xf] }
 0x13d   :  { %v1940_v11 = vadd.f32 %v1939_v28, %v1927_v6  ;;  %v3732_v34 = vor.u32 %v4196_v29, %v3731_v23  ;;  %v3723_v37 = vld [vmem:[#allocation8 + $0x1c0] sm:$0xf]  ;;  %v4037_v23 = vld [vmem:[#allocation8 + $0xe4] sm:$0xf]  ;;  %v3869_v29 = vld [vmem:[#allocation8 + $0xe8] sm:$0xf0] }
 0x13e   :  { %2547 = vmatpush.bf16.msrb.mxu2 %v3808_v27  ;;  %v1928_v41 = vpop.f32.mrf.mxu1  ;;  %v3744_v27 = vor.u32 %v4197_v16, %v3741_v21  ;;  %v3691_v6 = vld [vmem:[#allocation8 + $0x180] sm:$0xf]  ;;  %v1096_v16 = vpack.c.bf16 %v1094_v10, %v1094_v10  ;;  %v4038_v21 = vld [vmem:[#allocation8 + $0xe4] sm:$0xf0] }
 0x13f   :  { %v1952_v32 = vpop.f32.mrf.mxu3  ;;  %v4194_v41 = vld [vmem:[#allocation8 + $0x1c4] sm:$0xf0]  ;;  %2323 = vmatpush.bf16.msra.mxu1 %v3732_v34  ;;  %v3692_v9 = vor.u32 %v4186_v19, %v3691_v6  ;;  %v4025_v19 = vld [vmem:[#allocation8 + $0x84] sm:$0xf] }
 0x140   :  { %2522 = vmatpush.bf16.msrb.mxu0 %v3796_v33  ;;  %v1953_v14 = vadd.f32 %v1952_v32, %v1940_v11  ;;  %2348 = vmatpush.bf16.msra.mxu3 %v3744_v27  ;;  %v3724_v24 = vor.u32 %v4194_v41, %v3723_v37  ;;  %v3875_v11 = vld [vmem:[#allocation8 + $0xf0] sm:$0xf]  ;;  %v3868_v27 = vor.u32 %v4038_v21, %v3867_v17 }
 0x142   :  { %2548 = vmatpush.bf16.msrb.mxu2 %v3800_v35  ;;  %v3736_v35 = vor.u32 %v4195_v30, %v3733_v31  ;;  %v3872_v30 = vor.u32 %v4037_v23, %v3869_v29  ;;  %v3859_v31 = vld [vmem:[#allocation8 + $0xd0] sm:$0xf] }
 0x143   :  { %2324 = vmatpush.bf16.msra.mxu1 %v3724_v24  ;;  %v4033_v24 = vld [vmem:[#allocation8 + $0xc4] sm:$0xf] }
 0x144   :  { %2523 = vmatpush.bf16.msrb.mxu0 %v3788_v44  ;;  %v1941_v49 = vpop.f32.mrf.mxu2  ;;  %v3725_v44 = vld [vmem:[#allocation8 + $0x1c8] sm:$0xf0]  ;;  %2349 = vmatpush.bf16.msra.mxu3 %v3736_v35  ;;  %v3861_v35 = vld [vmem:[#allocation8 + $0xd8] sm:$0xf0] }
 0x146   :  { %2549 = vmatpush.bf16.msrb.mxu2 %v3792_v45  ;;  %v3728_v45 = vor.u32 %v4193_v39, %v3725_v44  ;;  %v3851_v39 = vld [vmem:[#allocation8 + $0xc0] sm:$0xf] }
 0x147   :  { %v1954_v55 = vpop.f32.mrf.mxu3  ;;  %2325 = vmatpush.bf16.msra.mxu1 %v3716_v54  ;;  %v3835_v54 = vld [vmem:[#allocation8 + $0xa0] sm:$0xf] }
 0x148   :  { %2524 = vmatpush.bf16.msrb.mxu0 %v3780_v50  ;;  %v4191_v50 = vld [vmem:[#allocation8 + $0x1b4] sm:$0xf]  ;;  %2350 = vmatpush.bf16.msra.mxu3 %v3728_v45 }
 0x14a   :  { %2550 = vmatpush.bf16.msrb.mxu2 %v3784_v56  ;;  %v3720_v56 = vor.u32 %v4191_v50, %v3717_v51  ;;  %v4031_v50 = vld [vmem:[#allocation8 + $0xb4] sm:$0xf] }
 0x14c   :  { %2525 = vmatpush.bf16.msrb.mxu0 %v3772_v60  ;;  %v4189_v60 = vld [vmem:[#allocation8 + $0x1a4] sm:$0xf]  ;;  %2351 = vmatpush.bf16.msra.mxu3 %v3720_v56 }
 0x14d   :  { %v3712_v18 = vor.u32 %v4189_v60, %v3709_v61 }
 0x14e   :  { %2551 = vmatpush.bf16.msrb.mxu2 %v3776_v63  ;;  %v3708_v63 = vor.u32 %v4190_v58, %v3707_v57  ;;  %v4029_v58 = vld [vmem:[#allocation8 + $0xa4] sm:$0xf] }
 0x150   :  { %2526 = vmatpush.bf16.msrb.mxu0 %v3764_v7  ;;  %2326 = vmatpush.bf16.msra.mxu1 %v3708_v63  ;;  %v3704_v7 = vor.u32 %v4187_v3, %v3701_v4  ;;  %v3827_v63 = vld [vmem:[#allocation8 + $0x90] sm:$0xf]  ;;  %v3832_v3 = vor.u32 %v4027_v1, %v3829_v2  ;;  %v3819_v4 = vld [vmem:[#allocation8 + $0x80] sm:$0xf] }
 0x151   :  { %2352 = vmatpush.bf16.msra.mxu3 %v3712_v18  ;;  %v3828_v18 = vor.u32 %v4028_v36, %v3827_v63 }
 0x152   :  { %2552 = vmatpush.bf16.msrb.mxu2 %v3768_v20  ;;  %v4185_v20 = vld [vmem:[#allocation8 + $0x184] sm:$0xf] }
 0x153   :  { %v3696_v22 = vor.u32 %v4185_v20, %v3693_v8 }
 0x154   :  { %2527 = vmatpush.bf16.msrb.mxu0 %v3756_v12  ;;  %v1965_v25 = vpop.f32.mrf.mxu0  ;;  %2327 = vmatpush.bf16.msra.mxu1 %v3700_v5  ;;  %v4040_v12 = vld [vmem:[#allocation8 + $0xf4] sm:$0xf0]  ;;  %v4026_v5 = vld [vmem:[#allocation8 + $0x84] sm:$0xf0] }
 0x155   :  { %v1966_v33 = vadd.f32 %v1965_v25, %v1953_v14  ;;  %2353 = vmatpush.bf16.msra.mxu3 %v3704_v7  ;;  %v3876_v14 = vor.u32 %v4040_v12, %v3875_v11  ;;  %v3821_v7 = vld [vmem:[#allocation8 + $0x88] sm:$0xf0]  ;;  %v3820_v20 = vor.u32 %v4026_v5, %v3819_v4 }
 0x156   :  { %2553 = vmatpush.bf16.msrb.mxu2 %v3760_v13  ;;  %v1978_v28 = vpop.f32.mrf.mxu1  ;;  %v4039_v13 = vld [vmem:[#allocation8 + $0xf4] sm:$0xf]  ;;  %v3824_v8 = vor.u32 %v4025_v19, %v3821_v7 }
 0x157   :  { %v1979_v32 = vadd.f32 %v1978_v28, %v1966_v33  ;;  %v3880_v26 = vor.u32 %v4039_v13, %v3877_v15  ;;  %v4036_v33 = vld [vmem:[#allocation8 + $0xd4] sm:$0xf0]  ;;  %v4035_v28 = vld [vmem:[#allocation8 + $0xd4] sm:$0xf] }
 0x158   :  { %2328 = vmatpush.bf16.msra.mxu1 %v3692_v9  ;;  %v3860_v34 = vor.u32 %v4036_v33, %v3859_v31  ;;  %v3864_v37 = vor.u32 %v4035_v28, %v3861_v35 }
 0x159   :  { %2354 = vmatpush.bf16.msra.mxu3 %v3696_v22 }
 0x15c   :  { %v1991_v40 = vpop.f32.mrf.mxu2  ;;  %v1967_v49 = vpop.f32.mrf.mxu0  ;;  %2533 = vmatpush.bf16.msrb.mxu1 %v3876_v14 }
 0x15d   :  { %v1992_v38 = vadd.f32 %v1991_v40, %v1979_v32  ;;  %2559 = vmatpush.bf16.msrb.mxu3 %v3880_v26  ;;  %v4034_v40 = vld [vmem:[#allocation8 + $0xc4] sm:$0xf0]  ;;  %v4032_v49 = vld [vmem:[#allocation8 + $0xb4] sm:$0xf0] }
 0x15e   :  { %v1980_v53 = vpop.f32.mrf.mxu1 }
 0x15f   :  { %v2004_v43 = vpop.f32.mrf.mxu3  ;;  %v3845_v53 = vld [vmem:[#allocation8 + $0xb8] sm:$0xf0] }
 0x160   :  { %v2005_v48 = vadd.f32 %v2004_v43, %v1992_v38  ;;  %2534 = vmatpush.bf16.msrb.mxu1 %v3868_v27  ;;  %v3852_v38 = vor.u32 %v4034_v40, %v3851_v39  ;;  %v3853_v43 = vld [vmem:[#allocation8 + $0xc8] sm:$0xf0]  ;;  %v3848_v57 = vor.u32 %v4031_v50, %v3845_v53 }
 0x161   :  { %2560 = vmatpush.bf16.msrb.mxu3 %v3872_v30  ;;  %v3856_v46 = vor.u32 %v4033_v24, %v3853_v43 }
 0x162   :  { %v2112_v55 = vmax.f32 %v2005_v48, 0.0  ;;  %v3843_v48 = vld [vmem:[#allocation8 + $0xb0] sm:$0xf] }
 0x163   :  { %v3844_v51 = vor.u32 %v4032_v49, %v3843_v48 }
 0x164   :  { %v2114_v59 = vpack.c.bf16 %v2112_v55, %v2112_v55  ;;  %v1993_v62 = vpop.f32.mrf.mxu2  ;;  %2535 = vmatpush.bf16.msrb.mxu1 %v3860_v34  ;;  %v4030_v55 = vld [vmem:[#allocation8 + $0xa4] sm:$0xf0] }
 0x165   :  { %2561 = vmatpush.bf16.msrb.mxu3 %v3864_v37  ;;  %v3836_v61 = vor.u32 %v4030_v55, %v3835_v54 }
 0x166   :  { %2316 = vmatmul.bf16.vlgmr.msra.gmra.mxu0 %v2114_v59  ;;  %2342 = vmatmul.bf16.vlgmr.msra.gmra.mxu2 %v2114_v59  ;;  %v3837_v59 = vld [vmem:[#allocation8 + $0xa8] sm:$0xf0] }
 0x167   :  { %v2006_v0 = vpop.f32.mrf.mxu3  ;;  %v3840_v62 = vor.u32 %v4029_v58, %v3837_v59 }
 0x168   :  { %2536 = vmatpush.bf16.msrb.mxu1 %v3852_v38  ;;  %v2572_v38 = vld [vmem:[%s4467_s4] sm:$0x3] }
 0x169   :  { %2562 = vmatpush.bf16.msrb.mxu3 %v3856_v46 }
 0x16c   :  { %2537 = vmatpush.bf16.msrb.mxu1 %v3844_v51  ;;  %v2575_v51 = vperm.slane %v2572_v38, 1 }
 0x16d   :  { %2563 = vmatpush.bf16.msrb.mxu3 %v3848_v57 }
 0x170   :  { %2538 = vmatpush.bf16.msrb.mxu1 %v3836_v61 }
 0x171   :  { %2564 = vmatpush.bf16.msrb.mxu3 %v3840_v62 }
 0x174   :  { %v2017_v25 = vpop.f32.mrf.mxu0  ;;  %2539 = vmatpush.bf16.msrb.mxu1 %v3828_v18 }
 0x175   :  { %v2018_v0 = vadd.f32 %v2017_v25, %v1261_v42  ;;  %2565 = vmatpush.bf16.msrb.mxu3 %v3832_v3 }
 0x176   :  { %2528 = vmatmul.bf16.vlgmr.msrb.gmra.mxu0 %v1096_v16  ;;  %2554 = vmatmul.bf16.vlgmr.msrb.gmra.mxu2 %v1096_v16  ;;  %v2030_v52 = vpop.f32.mrf.mxu1 }
 0x177   :  { %v2031_v6 = vadd.f32 %v2030_v52, %v2018_v0  ;;  %v1095_v52 = vmax.f32 %v4449_v47, 0.0 }
 0x178   :  { %2540 = vmatpush.bf16.msrb.mxu1 %v3820_v20 }
 0x179   :  { %2566 = vmatpush.bf16.msrb.mxu3 %v3824_v8  ;;  %v1097_v30 = vpack.c.bf16 %v1095_v52, %v1095_v52 }
 0x17c   :  { %v2043_v32 = vpop.f32.mrf.mxu2  ;;  %v2019_v44 = vpop.f32.mrf.mxu0 }
 0x17d   :  { %v2044_v9 = vadd.f32 %v2043_v32, %v2031_v6 }
 0x17e   :  { %v2032_v45 = vpop.f32.mrf.mxu1 }
 0x17f   :  { %v2056_v41 = vpop.f32.mrf.mxu3  ;;  %v2574_v45 = vperm.slane %v2572_v38, 0 }
 0x180   :  { %v2057_v22 = vadd.f32 %v2056_v41, %v2044_v9 }
 0x184   :  { %v2045_v56 = vpop.f32.mrf.mxu2 }
 0x187   :  { %v2058_v60 = vpop.f32.mrf.mxu3 }
 0x194   :  { %v2069_v10 = vpop.f32.mrf.mxu0 }
 0x195   :  { %v2070_v12 = vadd.f32 %v2069_v10, %v2057_v22 }
 0x196   :  { %v2082_v11 = vpop.f32.mrf.mxu1 }
 0x197   :  { %v2083_v13 = vadd.f32 %v2082_v11, %v2070_v12 }
 0x19c   :  { %v2095_v14 = vpop.f32.mrf.mxu2  ;;  %v2071_v16 = vpop.f32.mrf.mxu0 }
 0x19d   :  { %v2096_v15 = vadd.f32 %v2095_v14, %v2083_v13  ;;  %v2108_v26 = vpop.f32.mrf.mxu3 }
 0x19e   :  { %v2084_v17 = vpop.f32.mrf.mxu1 }
 0x19f   :  { %v2109_v21 = vadd.f32 %v2108_v26, %v2096_v15 }
 0x1a1   :  { %v2113_v23 = vmax.f32 %v2109_v21, 0.0 }
 0x1a3   :  { %v2115_v25 = vpack.c.bf16 %v2113_v23, %v2113_v23 }
 0x1a4   :  { %v2097_v27 = vpop.f32.mrf.mxu2 }
 0x1a5   :  { %v2110_v29 = vpop.f32.mrf.mxu3  ;;  %2329 = vmatmul.bf16.vlgmr.msra.gmra.mxu1 %v2115_v25  ;;  %2355 = vmatmul.bf16.vlgmr.msra.gmra.mxu3 %v2115_v25 }
 0x1b5   :  { %2541 = vmatmul.bf16.vlgmr.msrb.gmra.mxu1 %v1097_v30  ;;  %2567 = vmatmul.bf16.vlgmr.msrb.gmra.mxu3 %v1097_v30 }
 0x1e3   :  { %v2317_v31 = vpop.f32.mrf.mxu0 }
 0x1e9   :  { %v2343_v33 = vpop.f32.mrf.mxu2 }
 0x1eb   :  { %v2319_v28 = vpop.f32.mrf.mxu0 }
 0x1f1   :  { %v2345_v34 = vpop.f32.mrf.mxu2 }
 0x1f3   :  { %v2529_v35 = vpop.f32.mrf.mxu0 }
 0x1f9   :  { %v2555_v32 = vpop.f32.mrf.mxu2 }
 0x1fb   :  { %v2531_v37 = vpop.f32.mrf.mxu0 }
 0x201   :  { %v2557_v41 = vpop.f32.mrf.mxu2 }
 0x222   :  { %v2330_v39 = vpop.f32.mrf.mxu1 }
 0x223   :  { %v2331_v44 = vadd.f32 %v2330_v39, %v2317_v31 }
 0x225   :  { %v2530_v43 = vadd.f32 %v2529_v35, %v2331_v44 }
 0x228   :  { %v2356_v40 = vpop.f32.mrf.mxu3 }
 0x229   :  { %v2357_v42 = vadd.f32 %v2356_v40, %v2343_v33 }
 0x22a   :  { %v2332_v24 = vpop.f32.mrf.mxu1 }
 0x22b   :  { %v2556_v50 = vadd.f32 %v2555_v32, %v2357_v42 }
 0x230   :  { %v2358_v47 = vpop.f32.mrf.mxu3 }
 0x232   :  { %v2542_v46 = vpop.f32.mrf.mxu1 }
 0x233   :  { %v2543_v48 = vadd.f32 %v2542_v46, %v2530_v43 }
 0x235   :  { %v2578_v49 = vadd.f32 %v2574_v45, %v2543_v48 }
 0x237   :  { %2580 = vst [vmem:[#allocation10] sm:$0xff] %v2578_v49 }
 0x238   :  { %v2568_v53 = vpop.f32.mrf.mxu3 }
 0x239   :  { %v2569_v54 = vadd.f32 %v2568_v53, %v2556_v50 }
 0x23a   :  { %v2544_v55 = vpop.f32.mrf.mxu1 }
 0x23b   :  { %v2579_v56 = vadd.f32 %v2575_v51, %v2569_v54 }
 0x23d   :  { %2581 = vst [vmem:[#allocation10 + $0x8] sm:$0xff] %v2579_v56 }
 0x23e   :  { %2592 = dma.vmem_to_hbm [thread:$0]  %s2588_s16, 256, %s2590_s19, [#allocation4]  }
 0x240   :  { %v2570_v57 = vpop.f32.mrf.mxu3 }
 0x241   :  { %4336 = dma.done.wait [#allocation4], 256  }
 0x242   :  { %4337 = vsyncadd [#allocation4], 4294967040 }
 0x243   :  { %2597 = vsyncpa [#allocation3], 1 }
 0x244   :  { %2598 = vsyncpa [#allocation6], 1 }
 0x245   :  { %2599 = vsyncpa [#allocation9], 1 }
 0x246   :  { %2600 = vsyncpa [#allocation4], 1 }

</bundles_post_ra>
